<compile_context>
chip_gen: v7x
topology: tpu7x:2x2x1
jax: 0.10.0
libtpu: 0.0.40
codegen_flags: <defaults>
</compile_context>

<pallas_src>
import functools
import math

import jax
import jax.numpy as jnp
from jax.experimental import pallas as pl
from jax.experimental.pallas import tpu as pltpu


def _round_up(x, m):
    return (x + m - 1) // m * m


# ---------------------------------------------------------------------------
# Pallas kernels
# ---------------------------------------------------------------------------
def _conv_s2k4_kernel(*refs, m, ow, slope, has_bias):
    """Fused k=4/s=2 conv for one (sample, OC-tile).

    z0/z1: (1, Sz, Cg) column-phase space-to-depth inputs, Sz = (OH+1)*OW,
    Cg = 4*Cin.  The conv is four row-shifted matmuls accumulated in f32,
    followed by optional bias and LeakyReLU, stored as (1, M, TN).
    """
    if has_bias:
        z0_ref, z1_ref, w_ref, b_ref, o_ref = refs
    else:
        z0_ref, z1_ref, w_ref, o_ref = refs
        b_ref = None

    z0 = z0_ref[0]                                   # (Sz, Cg)
    z1 = z1_ref[0]

    acc = jnp.dot(z0[0:m], w_ref[0], preferred_element_type=jnp.float32)
    acc = acc + jnp.dot(z0[ow:ow + m], w_ref[1], preferred_element_type=jnp.float32)
    acc = acc + jnp.dot(z1[0:m], w_ref[2], preferred_element_type=jnp.float32)
    acc = acc + jnp.dot(z1[ow:ow + m], w_ref[3], preferred_element_type=jnp.float32)

    if has_bias:
        acc = acc + b_ref[...]                       # (M, TN) + (1, TN)
    if slope is not None:
        acc = jnp.where(acc >= 0.0, acc, slope * acc)
    o_ref[0] = acc.astype(o_ref.dtype)


def _instnorm_lrelu_kernel(x_ref, g_ref, b_ref, o_ref, *, eps, slope):
    """Per-sample InstanceNorm2d(affine) + LeakyReLU on a (1, S, TC) block.

    Channels (128-padded) on lanes, spatial S on sublanes; biased variance
    over spatial (matches torch).  bf16 in/out, f32 math.
    """
    x = x_ref[...].astype(jnp.float32)
    mean = jnp.mean(x, axis=1, keepdims=True)
    diff = x - mean
    var = jnp.mean(diff * diff, axis=1, keepdims=True)
    y = diff * jax.lax.rsqrt(var + eps)
    y = y * g_ref[...] + b_ref[...]
    o_ref[...] = jnp.where(y >= 0.0, y, slope * y).astype(o_ref.dtype)


# ---------------------------------------------------------------------------
# Host-side helpers + pallas_call wrappers
# ---------------------------------------------------------------------------
def _space_split(x_nhwc, pad, dtype):
    """k=4/s=2 conv input -> two column-phase space-to-depth tensors.

    z0[n, r*OW + j, (da, db, c)] = xpad[n, 2r+da, 2j+db,   c]
    z1[n, r*OW + j, (da, db, c)] = xpad[n, 2r+da, 2j+2+db, c]
    """
    N, H, W, C = x_nhwc.shape
    xp = x_nhwc if pad == 0 else jnp.pad(
        x_nhwc, ((0, 0), (pad, pad), (pad, pad), (0, 0)))
    Hp, Wp = H + 2 * pad, W + 2 * pad
    assert Hp % 2 == 0 and Wp % 2 == 0, "even padded spatial dims required"
    Hy = Hp // 2
    OH = Hy - 1
    OW = Wp // 2 - 1

    def phase(col0):
        v = xp[:, :, col0:col0 + 2 * OW, :]          # (N, Hp, 2*OW, C)
        v = v.reshape(N, Hy, 2, OW, 2, C)
        v = v.transpose(0, 1, 3, 2, 4, 5)            # (N, Hy, OW, da, db, C)
        return v.reshape(N, Hy * OW, 4 * C).astype(dtype)

    return phase(0), phase(2), OH, OW


def conv_s2k4_pallas(x_nhwc, w4, bias, *, pad, slope, out_dtype):
    """Conv2d(k=4, s=2, padding=pad) + optional bias + optional LeakyReLU.

    x_nhwc : (N, H, W, Cin)    (Cin may already be 128-padded; zeros propagate)
    w4     : (4, 4*Cin, OCp)   pre-transformed taps [A0B0, A1B0, A0B1, A1B1]
    bias   : (1, OCp) f32 or None
    returns: ((N, OH*OW, OCp) out_dtype, (OH, OW))
    """
    N, H, W, C = x_nhwc.shape
    ntaps, Cg, OCp = w4.shape
    assert ntaps == 4 and Cg == 4 * C and OCp % 128 == 0

    z0, z1, OH, OW = _space_split(x_nhwc, pad, w4.dtype)
    Sz = z0.shape[1]
    M = OH * OW
    TN = min(OCp, 256)
    has_bias = bias is not None

    in_specs = [
        pl.BlockSpec((1, Sz, Cg), lambda n, t: (n, 0, 0)),
        pl.BlockSpec((1, Sz, Cg), lambda n, t: (n, 0, 0)),
        pl.BlockSpec((4, Cg, TN), lambda n, t: (0, 0, t)),
    ]
    args = [z0, z1, w4]
    if has_bias:
        in_specs.append(pl.BlockSpec((1, TN), lambda n, t: (0, t)))
        args.append(bias)

    out = pl.pallas_call(
        functools.partial(_conv_s2k4_kernel, m=M, ow=OW, slope=slope,
                          has_bias=has_bias),
        out_shape=jax.ShapeDtypeStruct((N, M, OCp), out_dtype),
        grid=(N, OCp // TN),                         # OC tile fastest: z reused
        in_specs=in_specs,
        out_specs=pl.BlockSpec((1, M, TN), lambda n, t: (n, 0, t)),
        compiler_params=pltpu.CompilerParams(
            dimension_semantics=("parallel", "parallel")),
    )(*args)
    return out, (OH, OW)


def instnorm_lrelu_pallas(x_nsc, gamma_p, beta_p, *, eps=1e-5, slope=0.2):
    """InstanceNorm(affine) + LeakyReLU on (N, S, Cp), Cp a multiple of 128."""
    N, S, Cp = x_nsc.shape
    TC = 512 if Cp % 512 == 0 else (256 if Cp % 256 == 0 else 128)
    # TODO(synk): two-pass (sum/sumsq) S-tiling for very large spatial extents.
    return pl.pallas_call(
        functools.partial(_instnorm_lrelu_kernel, eps=eps, slope=slope),
        out_shape=jax.ShapeDtypeStruct((N, S, Cp), x_nsc.dtype),
        grid=(N, Cp // TC),
        in_specs=[
            pl.BlockSpec((1, S, TC), lambda n, c: (n, 0, c)),
            pl.BlockSpec((1, 1, TC), lambda n, c: (0, 0, c)),
            pl.BlockSpec((1, 1, TC), lambda n, c: (0, 0, c)),
        ],
        out_specs=pl.BlockSpec((1, S, TC), lambda n, c: (n, 0, c)),
        compiler_params=pltpu.CompilerParams(
            dimension_semantics=("parallel", "parallel")),
    )(x_nsc, gamma_p, beta_p)


# ---------------------------------------------------------------------------
# Critic: parameter construction, one-time prep, forward
# ---------------------------------------------------------------------------
def init_critic_params(key, hidden_channels, image_shape):
    in_c, in_h, in_w = image_shape[-3:]
    n_blocks = int(math.log2(in_w)) - 3
    final_hidden = hidden_channels * 2 ** n_blocks

    keys = jax.random.split(key, 4 + 2 * n_blocks)
    ki = iter(range(len(keys)))

    def conv_w(k_, oc, ic, ks):
        return 0.05 * jax.random.normal(keys[k_], (oc, ic, ks, ks), jnp.float32)

    params = {
        "w0": conv_w(next(ki), hidden_channels, in_c, 4),
        "b0": 0.05 * jax.random.normal(keys[next(ki)], (hidden_channels,), jnp.float32),
        "blocks": [],
    }
    ch = hidden_channels
    for _ in range(n_blocks):
        w = conv_w(next(ki), ch * 2, ch, 4)                         # bias=False conv
        gamma = 1.0 + 0.05 * jax.random.normal(keys[next(ki)], (ch * 2,), jnp.float32)
        beta = jnp.zeros((ch * 2,), jnp.float32)
        params["blocks"].append({"w": w, "gamma": gamma, "beta": beta})
        ch *= 2

    params["wc"] = conv_w(next(ki), 1, final_hidden, 4)
    params["bc"] = 0.05 * jax.random.normal(keys[next(ki)], (1,), jnp.float32)
    return params


def _prep_conv_weight(w_oihw, in_cp, dtype):
    """(OC, IC, 4, 4) torch-layout weight -> (4, 4*in_cp, OCp) tap matrices.

    Tap order matches _conv_s2k4_kernel: [A0B0, A1B0, A0B1, A1B1]; row order
    within a tap is (da, db, c).  Rows for c >= IC and columns for oc >= OC
    are zero so channel-padded activations flow straight through.
    """
    OC, IC, KH, KW = w_oihw.shape
    assert KH == 4 and KW == 4 and in_cp >= IC
    OCp = _round_up(OC, 128)
    w = jnp.transpose(w_oihw, (2, 3, 1, 0))                          # (kh, kw, ic, oc)
    w = jnp.pad(w, ((0, 0), (0, 0), (0, in_cp - IC), (0, OCp - OC)))
    w = w.reshape(2, 2, 2, 2, in_cp, OCp)                            # (A, da, B, db, c, oc)
    w = w.transpose(0, 2, 1, 3, 4, 5)                                # (A, B, da, db, c, oc)
    w = w.reshape(2, 2, 4 * in_cp, OCp)
    w4 = jnp.stack([w[0, 0], w[1, 0], w[0, 1], w[1, 1]], axis=0)     # (4, Cg, OCp)
    return w4.astype(dtype)


def _prep_bias(b):
    oc = b.shape[0]
    return jnp.pad(b.astype(jnp.float32), (0, _round_up(oc, 128) - oc)).reshape(1, -1)


def prepare_critic_params(params, in_channels):
    """One-time weight prep (transpose + zero-pad + cast), outside the fwd path."""
    kp = {
        "w0": _prep_conv_weight(params["w0"], in_channels, jnp.bfloat16),
        "b0": _prep_bias(params["b0"]),
        "blocks": [],
    }
    cp = _round_up(params["w0"].shape[0], 128)           # carried padded channels
    for blk in params["blocks"]:
        oc = blk["w"].shape[0]
        ocp = _round_up(oc, 128)
        kp["blocks"].append({
            "w": _prep_conv_weight(blk["w"], cp, jnp.bfloat16),
            "gamma": jnp.pad(blk["gamma"].astype(jnp.float32),
                             (0, ocp - oc)).reshape(1, 1, ocp),
            "beta": jnp.pad(blk["beta"].astype(jnp.float32),
                            (0, ocp - oc)).reshape(1, 1, ocp),
        })
        cp = ocp
    # Head conv is tiny (M=1, OC=1): run it in f32 (avoids odd-offset packed
    # bf16 row slicing and keeps the critic value at full precision).
    kp["wc"] = _prep_conv_weight(params["wc"], cp, jnp.float32)
    kp["bc"] = _prep_bias(params["bc"])
    return kp


def critic_forward(img_nchw, kp):
    x = jnp.transpose(img_nchw, (0, 2, 3, 1))            # NCHW -> NHWC once
    N = x.shape[0]

    # feat_extractor head: Conv(k4,s2,p1) + LeakyReLU(0.2); bf16, 128-padded OC.
    x, (OH, OW) = conv_s2k4_pallas(x, kp["w0"], kp["b0"], pad=1, slope=0.2,
                                   out_dtype=jnp.bfloat16)
    cp = kp["w0"].shape[-1]

    # encoding blocks: Conv(k4,s2,p1,bias=False) + InstanceNorm(affine) + LeakyReLU.
    for blk in kp["blocks"]:
        x, (OH, OW) = conv_s2k4_pallas(x.reshape(N, OH, OW, cp), blk["w"], None,
                                       pad=1, slope=None, out_dtype=jnp.bfloat16)
        x = instnorm_lrelu_pallas(x, blk["gamma"], blk["beta"], eps=1e-5, slope=0.2)
        cp = blk["w"].shape[-1]

    # critic head: Conv(k4,s2,p0) -> (N, 1, 1, 1) f32; valid OC column is 0.
    y, _ = conv_s2k4_pallas(x.reshape(N, OH, OW, cp), kp["wc"], kp["bc"],
                            pad=0, slope=None, out_dtype=jnp.float32)
    return y[:, :, 0:1].reshape(N, 1, 1, 1)               # already NCHW (N,1,1,1)


if __name__ == "__main__":
    key = jax.random.PRNGKey(0)
    k_img, k_par = jax.random.split(key)

    hidden_channels = 8
    image_shape = (4, 16, 16)          # (C, H, W); W=16 -> 1 encoding block
    batch = 2

    img = jax.random.normal(k_img, (batch, *image_shape), jnp.float32)
    params = init_critic_params(k_par, hidden_channels, image_shape)
    kparams = prepare_critic_params(params, image_shape[0])   # one-time prep

    fwd = jax.jit(critic_forward)
    out = jax.block_until_ready(fwd(img, kparams))
    assert out.shape == (batch, 1, 1, 1), out.shape
    assert bool(jnp.all(jnp.isfinite(out)))
    print("KERNEL_OK")
</pallas_src>

<mosaic_0001>
module attributes {stable_mosaic.version = 11 : i64} {
  func.func @_conv_s2k4_kernel(%arg0: i32, %arg1: i32, %arg2: memref<1x72x16xbf16, #tpu.memory_space<vmem>>, %arg3: memref<1x72x16xbf16, #tpu.memory_space<vmem>>, %arg4: memref<4x16x128xbf16, #tpu.memory_space<vmem>>, %arg5: memref<1x128xf32, #tpu.memory_space<vmem>>, %arg6: memref<1x64x128xbf16, #tpu.memory_space<vmem>>) attributes {dimension_semantics = [#tpu.dimension_semantics<parallel>, #tpu.dimension_semantics<parallel>], iteration_bounds = array<i64: 2, 1>, scalar_prefetch = 0 : i64, scratch_operands = 0 : i64, tpu.core_type = #tpu.core_type<tc>, window_params = [{transform_indices = @transform_0, window_bounds = array<i64: 1, 72, 16>}, {transform_indices = @transform_1, window_bounds = array<i64: 1, 72, 16>}, {transform_indices = @transform_2, window_bounds = array<i64: 4, 16, 128>}, {transform_indices = @transform_3, window_bounds = array<i64: 1, 128>}, {transform_indices = @transform_4, window_bounds = array<i64: 1, 64, 128>}]} {
    %c0 = arith.constant 0 : index
    %c0_0 = arith.constant 0 : index
    %c0_1 = arith.constant 0 : index
    %0 = vector.load %arg2[%c0, %c0_0, %c0_1] : memref<1x72x16xbf16, #tpu.memory_space<vmem>>, vector<1x72x16xbf16>
    %1 = vector.shape_cast %0 : vector<1x72x16xbf16> to vector<72x16xbf16>
    %c0_2 = arith.constant 0 : index
    %c0_3 = arith.constant 0 : index
    %c0_4 = arith.constant 0 : index
    %2 = vector.load %arg3[%c0_2, %c0_3, %c0_4] : memref<1x72x16xbf16, #tpu.memory_space<vmem>>, vector<1x72x16xbf16>
    %3 = vector.shape_cast %2 : vector<1x72x16xbf16> to vector<72x16xbf16>
    %4 = vector.extract_strided_slice %1 {offsets = [0, 0], sizes = [64, 16], strides = [1, 1]} : vector<72x16xbf16> to vector<64x16xbf16>
    %c0_5 = arith.constant 0 : index
    %c0_6 = arith.constant 0 : index
    %c0_7 = arith.constant 0 : index
    %5 = vector.load %arg4[%c0_5, %c0_6, %c0_7] : memref<4x16x128xbf16, #tpu.memory_space<vmem>>, vector<1x16x128xbf16>
    %6 = vector.shape_cast %5 : vector<1x16x128xbf16> to vector<16x128xbf16>
    %cst = arith.constant dense<0.000000e+00> : vector<64x128xf32>
    %7 = tpu.matmul %4, %6, %cst {dimension_numbers = #tpu.dot_dimension_numbers<[1], [0], [0], [1], [0, 0, 1, 1], [], []>} : vector<64x16xbf16>, vector<16x128xbf16>, vector<64x128xf32> -> vector<64x128xf32>
    %8 = vector.extract_strided_slice %1 {offsets = [8, 0], sizes = [64, 16], strides = [1, 1]} : vector<72x16xbf16> to vector<64x16xbf16>
    %c1 = arith.constant 1 : index
    %c0_8 = arith.constant 0 : index
    %c0_9 = arith.constant 0 : index
    %9 = vector.load %arg4[%c1, %c0_8, %c0_9] : memref<4x16x128xbf16, #tpu.memory_space<vmem>>, vector<1x16x128xbf16>
    %10 = vector.shape_cast %9 : vector<1x16x128xbf16> to vector<16x128xbf16>
    %cst_10 = arith.constant dense<0.000000e+00> : vector<64x128xf32>
    %11 = tpu.matmul %8, %10, %cst_10 {dimension_numbers = #tpu.dot_dimension_numbers<[1], [0], [0], [1], [0, 0, 1, 1], [], []>} : vector<64x16xbf16>, vector<16x128xbf16>, vector<64x128xf32> -> vector<64x128xf32>
    %12 = arith.addf %7, %11 : vector<64x128xf32>
    %13 = vector.extract_strided_slice %3 {offsets = [0, 0], sizes = [64, 16], strides = [1, 1]} : vector<72x16xbf16> to vector<64x16xbf16>
    %c2 = arith.constant 2 : index
    %c0_11 = arith.constant 0 : index
    %c0_12 = arith.constant 0 : index
    %14 = vector.load %arg4[%c2, %c0_11, %c0_12] : memref<4x16x128xbf16, #tpu.memory_space<vmem>>, vector<1x16x128xbf16>
    %15 = vector.shape_cast %14 : vector<1x16x128xbf16> to vector<16x128xbf16>
    %cst_13 = arith.constant dense<0.000000e+00> : vector<64x128xf32>
    %16 = tpu.matmul %13, %15, %cst_13 {dimension_numbers = #tpu.dot_dimension_numbers<[1], [0], [0], [1], [0, 0, 1, 1], [], []>} : vector<64x16xbf16>, vector<16x128xbf16>, vector<64x128xf32> -> vector<64x128xf32>
    %17 = arith.addf %12, %16 : vector<64x128xf32>
    %18 = vector.extract_strided_slice %3 {offsets = [8, 0], sizes = [64, 16], strides = [1, 1]} : vector<72x16xbf16> to vector<64x16xbf16>
    %c3 = arith.constant 3 : index
    %c0_14 = arith.constant 0 : index
    %c0_15 = arith.constant 0 : index
    %19 = vector.load %arg4[%c3, %c0_14, %c0_15] : memref<4x16x128xbf16, #tpu.memory_space<vmem>>, vector<1x16x128xbf16>
    %20 = vector.shape_cast %19 : vector<1x16x128xbf16> to vector<16x128xbf16>
    %cst_16 = arith.constant dense<0.000000e+00> : vector<64x128xf32>
    %21 = tpu.matmul %18, %20, %cst_16 {dimension_numbers = #tpu.dot_dimension_numbers<[1], [0], [0], [1], [0, 0, 1, 1], [], []>} : vector<64x16xbf16>, vector<16x128xbf16>, vector<64x128xf32> -> vector<64x128xf32>
    %22 = arith.addf %17, %21 : vector<64x128xf32>
    %c0_17 = arith.constant 0 : index
    %c0_18 = arith.constant 0 : index
    %23 = vector.load %arg5[%c0_17, %c0_18] : memref<1x128xf32, #tpu.memory_space<vmem>>, vector<1x128xf32>
    %24 = vector.broadcast %23 : vector<1x128xf32> to vector<64x128xf32>
    %25 = arith.addf %22, %24 : vector<64x128xf32>
    %cst_19 = arith.constant 0.000000e+00 : f32
    %26 = vector.broadcast %cst_19 : f32 to vector<64x128xf32>
    %27 = arith.cmpf oge, %25, %26 : vector<64x128xf32>
    %cst_20 = arith.constant 2.000000e-01 : f32
    %28 = vector.broadcast %cst_20 : f32 to vector<64x128xf32>
    %29 = arith.mulf %28, %25 : vector<64x128xf32>
    %30 = arith.select %27, %25, %29 : vector<64x128xi1>, vector<64x128xf32>
    %31 = arith.truncf %30 : vector<64x128xf32> to vector<64x128xbf16>
    %c0_21 = arith.constant 0 : index
    %c0_22 = arith.constant 0 : index
    %c0_23 = arith.constant 0 : index
    %32 = vector.load %arg6[%c0_21, %c0_22, %c0_23] : memref<1x64x128xbf16, #tpu.memory_space<vmem>>, vector<1x64x128xbf16>
    %33 = vector.shape_cast %32 : vector<1x64x128xbf16> to vector<64x128xbf16>
    %34 = vector.shape_cast %31 : vector<64x128xbf16> to vector<1x64x128xbf16>
    tpu.vector_store %arg6[%c0_21, %c0_22, %c0_23], %34 {strides = array<i32>} : memref<1x64x128xbf16, #tpu.memory_space<vmem>>, vector<1x64x128xbf16>,
    return
  }
  func.func @transform_0(%arg0: i32, %arg1: i32) -> (i32, i32, i32) {
    %c0_i32 = arith.constant 0 : i32
    %c0_i32_0 = arith.constant 0 : i32
    %c0_i32_1 = arith.constant 0 : i32
    return %arg0, %c0_i32, %c0_i32_0 : i32, i32, i32
  }
  func.func @transform_1(%arg0: i32, %arg1: i32) -> (i32, i32, i32) {
    %c0_i32 = arith.constant 0 : i32
    %c0_i32_0 = arith.constant 0 : i32
    %c0_i32_1 = arith.constant 0 : i32
    return %arg0, %c0_i32, %c0_i32_0 : i32, i32, i32
  }
  func.func @transform_2(%arg0: i32, %arg1: i32) -> (i32, i32, i32) {
    %c0_i32 = arith.constant 0 : i32
    %c0_i32_0 = arith.constant 0 : i32
    %c0_i32_1 = arith.constant 0 : i32
    return %c0_i32, %c0_i32_0, %arg1 : i32, i32, i32
  }
  func.func @transform_3(%arg0: i32, %arg1: i32) -> (i32, i32) {
    %c0_i32 = arith.constant 0 : i32
    %c0_i32_0 = arith.constant 0 : i32
    return %c0_i32, %arg1 : i32, i32
  }
  func.func @transform_4(%arg0: i32, %arg1: i32) -> (i32, i32, i32) {
    %c0_i32 = arith.constant 0 : i32
    %c0_i32_0 = arith.constant 0 : i32
    return %arg0, %c0_i32, %arg1 : i32, i32, i32
  }
}

module attributes {stable_mosaic.version = 11 : i64} {
  func.func @_conv_s2k4_kernel(%arg0: i32, %arg1: i32, %arg2: memref<1x20x512xbf16, #tpu.memory_space<vmem>>, %arg3: memref<1x20x512xbf16, #tpu.memory_space<vmem>>, %arg4: memref<4x512x128xbf16, #tpu.memory_space<vmem>>, %arg5: memref<1x16x128xbf16, #tpu.memory_space<vmem>>) attributes {dimension_semantics = [#tpu.dimension_semantics<parallel>, #tpu.dimension_semantics<parallel>], iteration_bounds = array<i64: 2, 1>, scalar_prefetch = 0 : i64, scratch_operands = 0 : i64, tpu.core_type = #tpu.core_type<tc>, window_params = [{transform_indices = @transform_0, window_bounds = array<i64: 1, 20, 512>}, {transform_indices = @transform_1, window_bounds = array<i64: 1, 20, 512>}, {transform_indices = @transform_2, window_bounds = array<i64: 4, 512, 128>}, {transform_indices = @transform_3, window_bounds = array<i64: 1, 16, 128>}]} {
    %c0 = arith.constant 0 : index
    %c0_0 = arith.constant 0 : index
    %c0_1 = arith.constant 0 : index
    %0 = vector.load %arg2[%c0, %c0_0, %c0_1] : memref<1x20x512xbf16, #tpu.memory_space<vmem>>, vector<1x20x512xbf16>
    %1 = vector.shape_cast %0 : vector<1x20x512xbf16> to vector<20x512xbf16>
    %c0_2 = arith.constant 0 : index
    %c0_3 = arith.constant 0 : index
    %c0_4 = arith.constant 0 : index
    %2 = vector.load %arg3[%c0_2, %c0_3, %c0_4] : memref<1x20x512xbf16, #tpu.memory_space<vmem>>, vector<1x20x512xbf16>
    %3 = vector.shape_cast %2 : vector<1x20x512xbf16> to vector<20x512xbf16>
    %4 = vector.extract_strided_slice %1 {offsets = [0, 0], sizes = [16, 512], strides = [1, 1]} : vector<20x512xbf16> to vector<16x512xbf16>
    %c0_5 = arith.constant 0 : index
    %c0_6 = arith.constant 0 : index
    %c0_7 = arith.constant 0 : index
    %5 = vector.load %arg4[%c0_5, %c0_6, %c0_7] : memref<4x512x128xbf16, #tpu.memory_space<vmem>>, vector<1x512x128xbf16>
    %6 = vector.shape_cast %5 : vector<1x512x128xbf16> to vector<512x128xbf16>
    %cst = arith.constant dense<0.000000e+00> : vector<16x128xf32>
    %7 = tpu.matmul %4, %6, %cst {dimension_numbers = #tpu.dot_dimension_numbers<[1], [0], [0], [1], [0, 0, 1, 1], [], []>} : vector<16x512xbf16>, vector<512x128xbf16>, vector<16x128xf32> -> vector<16x128xf32>
    %8 = vector.extract_strided_slice %1 {offsets = [4, 0], sizes = [16, 512], strides = [1, 1]} : vector<20x512xbf16> to vector<16x512xbf16>
    %c1 = arith.constant 1 : index
    %c0_8 = arith.constant 0 : index
    %c0_9 = arith.constant 0 : index
    %9 = vector.load %arg4[%c1, %c0_8, %c0_9] : memref<4x512x128xbf16, #tpu.memory_space<vmem>>, vector<1x512x128xbf16>
    %10 = vector.shape_cast %9 : vector<1x512x128xbf16> to vector<512x128xbf16>
    %cst_10 = arith.constant dense<0.000000e+00> : vector<16x128xf32>
    %11 = tpu.matmul %8, %10, %cst_10 {dimension_numbers = #tpu.dot_dimension_numbers<[1], [0], [0], [1], [0, 0, 1, 1], [], []>} : vector<16x512xbf16>, vector<512x128xbf16>, vector<16x128xf32> -> vector<16x128xf32>
    %12 = arith.addf %7, %11 : vector<16x128xf32>
    %13 = vector.extract_strided_slice %3 {offsets = [0, 0], sizes = [16, 512], strides = [1, 1]} : vector<20x512xbf16> to vector<16x512xbf16>
    %c2 = arith.constant 2 : index
    %c0_11 = arith.constant 0 : index
    %c0_12 = arith.constant 0 : index
    %14 = vector.load %arg4[%c2, %c0_11, %c0_12] : memref<4x512x128xbf16, #tpu.memory_space<vmem>>, vector<1x512x128xbf16>
    %15 = vector.shape_cast %14 : vector<1x512x128xbf16> to vector<512x128xbf16>
    %cst_13 = arith.constant dense<0.000000e+00> : vector<16x128xf32>
    %16 = tpu.matmul %13, %15, %cst_13 {dimension_numbers = #tpu.dot_dimension_numbers<[1], [0], [0], [1], [0, 0, 1, 1], [], []>} : vector<16x512xbf16>, vector<512x128xbf16>, vector<16x128xf32> -> vector<16x128xf32>
    %17 = arith.addf %12, %16 : vector<16x128xf32>
    %18 = vector.extract_strided_slice %3 {offsets = [4, 0], sizes = [16, 512], strides = [1, 1]} : vector<20x512xbf16> to vector<16x512xbf16>
    %c3 = arith.constant 3 : index
    %c0_14 = arith.constant 0 : index
    %c0_15 = arith.constant 0 : index
    %19 = vector.load %arg4[%c3, %c0_14, %c0_15] : memref<4x512x128xbf16, #tpu.memory_space<vmem>>, vector<1x512x128xbf16>
    %20 = vector.shape_cast %19 : vector<1x512x128xbf16> to vector<512x128xbf16>
    %cst_16 = arith.constant dense<0.000000e+00> : vector<16x128xf32>
    %21 = tpu.matmul %18, %20, %cst_16 {dimension_numbers = #tpu.dot_dimension_numbers<[1], [0], [0], [1], [0, 0, 1, 1], [], []>} : vector<16x512xbf16>, vector<512x128xbf16>, vector<16x128xf32> -> vector<16x128xf32>
    %22 = arith.addf %17, %21 : vector<16x128xf32>
    %23 = arith.truncf %22 : vector<16x128xf32> to vector<16x128xbf16>
    %c0_17 = arith.constant 0 : index
    %c0_18 = arith.constant 0 : index
    %c0_19 = arith.constant 0 : index
    %24 = vector.load %arg5[%c0_17, %c0_18, %c0_19] : memref<1x16x128xbf16, #tpu.memory_space<vmem>>, vector<1x16x128xbf16>
    %25 = vector.shape_cast %24 : vector<1x16x128xbf16> to vector<16x128xbf16>
    %26 = vector.shape_cast %23 : vector<16x128xbf16> to vector<1x16x128xbf16>
    tpu.vector_store %arg5[%c0_17, %c0_18, %c0_19], %26 {strides = array<i32>} : memref<1x16x128xbf16, #tpu.memory_space<vmem>>, vector<1x16x128xbf16>,
    return
  }
  func.func @transform_0(%arg0: i32, %arg1: i32) -> (i32, i32, i32) {
    %c0_i32 = arith.constant 0 : i32
    %c0_i32_0 = arith.constant 0 : i32
    %c0_i32_1 = arith.constant 0 : i32
    return %arg0, %c0_i32, %c0_i32_0 : i32, i32, i32
  }
  func.func @transform_1(%arg0: i32, %arg1: i32) -> (i32, i32, i32) {
    %c0_i32 = arith.constant 0 : i32
    %c0_i32_0 = arith.constant 0 : i32
    %c0_i32_1 = arith.constant 0 : i32
    return %arg0, %c0_i32, %c0_i32_0 : i32, i32, i32
  }
  func.func @transform_2(%arg0: i32, %arg1: i32) -> (i32, i32, i32) {
    %c0_i32 = arith.constant 0 : i32
    %c0_i32_0 = arith.constant 0 : i32
    %c0_i32_1 = arith.constant 0 : i32
    return %c0_i32, %c0_i32_0, %arg1 : i32, i32, i32
  }
  func.func @transform_3(%arg0: i32, %arg1: i32) -> (i32, i32, i32) {
    %c0_i32 = arith.constant 0 : i32
    %c0_i32_0 = arith.constant 0 : i32
    return %arg0, %c0_i32, %arg1 : i32, i32, i32
  }
}

module attributes {stable_mosaic.version = 11 : i64} {
  func.func @_instnorm_lrelu_kernel(%arg0: i32, %arg1: i32, %arg2: memref<1x16x128xbf16, #tpu.memory_space<vmem>>, %arg3: memref<1x1x128xf32, #tpu.memory_space<vmem>>, %arg4: memref<1x1x128xf32, #tpu.memory_space<vmem>>, %arg5: memref<1x16x128xbf16, #tpu.memory_space<vmem>>) attributes {dimension_semantics = [#tpu.dimension_semantics<parallel>, #tpu.dimension_semantics<parallel>], iteration_bounds = array<i64: 2, 1>, scalar_prefetch = 0 : i64, scratch_operands = 0 : i64, tpu.core_type = #tpu.core_type<tc>, window_params = [{transform_indices = @transform_0, window_bounds = array<i64: 1, 16, 128>}, {transform_indices = @transform_1, window_bounds = array<i64: 1, 1, 128>}, {transform_indices = @transform_2, window_bounds = array<i64: 1, 1, 128>}, {transform_indices = @transform_3, window_bounds = array<i64: 1, 16, 128>}]} {
    %c0 = arith.constant 0 : index
    %c0_0 = arith.constant 0 : index
    %c0_1 = arith.constant 0 : index
    %0 = vector.load %arg2[%c0, %c0_0, %c0_1] : memref<1x16x128xbf16, #tpu.memory_space<vmem>>, vector<1x16x128xbf16>
    %1 = arith.extf %0 : vector<1x16x128xbf16> to vector<1x16x128xf32>
    %cst = arith.constant dense<0.000000e+00> : vector<1x128xf32>
    %2 = vector.multi_reduction <add>, %1, %cst [1] : vector<1x16x128xf32> to vector<1x128xf32>
    %3 = vector.shape_cast %2 : vector<1x128xf32> to vector<1x1x128xf32>
    %cst_2 = arith.constant 1.600000e+01 : f32
    %4 = vector.broadcast %cst_2 : f32 to vector<1x1x128xf32>
    %5 = arith.divf %3, %4 : vector<1x1x128xf32>
    %6 = vector.broadcast %5 : vector<1x1x128xf32> to vector<1x16x128xf32>
    %7 = arith.subf %1, %6 : vector<1x16x128xf32>
    %8 = arith.mulf %7, %7 : vector<1x16x128xf32>
    %cst_3 = arith.constant dense<0.000000e+00> : vector<1x128xf32>
    %9 = vector.multi_reduction <add>, %8, %cst_3 [1] : vector<1x16x128xf32> to vector<1x128xf32>
    %10 = vector.shape_cast %9 : vector<1x128xf32> to vector<1x1x128xf32>
    %cst_4 = arith.constant 1.600000e+01 : f32
    %11 = vector.broadcast %cst_4 : f32 to vector<1x1x128xf32>
    %12 = arith.divf %10, %11 : vector<1x1x128xf32>
    %cst_5 = arith.constant 9.99999974E-6 : f32
    %13 = vector.broadcast %cst_5 : f32 to vector<1x1x128xf32>
    %14 = arith.addf %12, %13 : vector<1x1x128xf32>
    %15 = math.rsqrt %14 : vector<1x1x128xf32>
    %16 = vector.broadcast %15 : vector<1x1x128xf32> to vector<1x16x128xf32>
    %17 = arith.mulf %7, %16 : vector<1x16x128xf32>
    %c0_6 = arith.constant 0 : index
    %c0_7 = arith.constant 0 : index
    %c0_8 = arith.constant 0 : index
    %18 = vector.load %arg3[%c0_6, %c0_7, %c0_8] : memref<1x1x128xf32, #tpu.memory_space<vmem>>, vector<1x1x128xf32>
    %19 = vector.broadcast %18 : vector<1x1x128xf32> to vector<1x16x128xf32>
    %20 = arith.mulf %17, %19 : vector<1x16x128xf32>
    %c0_9 = arith.constant 0 : index
    %c0_10 = arith.constant 0 : index
    %c0_11 = arith.constant 0 : index
    %21 = vector.load %arg4[%c0_9, %c0_10, %c0_11] : memref<1x1x128xf32, #tpu.memory_space<vmem>>, vector<1x1x128xf32>
    %22 = vector.broadcast %21 : vector<1x1x128xf32> to vector<1x16x128xf32>
    %23 = arith.addf %20, %22 : vector<1x16x128xf32>
    %cst_12 = arith.constant 0.000000e+00 : f32
    %24 = vector.broadcast %cst_12 : f32 to vector<1x16x128xf32>
    %25 = arith.cmpf oge, %23, %24 : vector<1x16x128xf32>
    %cst_13 = arith.constant 2.000000e-01 : f32
    %26 = vector.broadcast %cst_13 : f32 to vector<1x16x128xf32>
    %27 = arith.mulf %26, %23 : vector<1x16x128xf32>
    %28 = arith.select %25, %23, %27 : vector<1x16x128xi1>, vector<1x16x128xf32>
    %29 = arith.truncf %28 : vector<1x16x128xf32> to vector<1x16x128xbf16>
    %c0_14 = arith.constant 0 : index
    %c0_15 = arith.constant 0 : index
    %c0_16 = arith.constant 0 : index
    %30 = vector.load %arg5[%c0_14, %c0_15, %c0_16] : memref<1x16x128xbf16, #tpu.memory_space<vmem>>, vector<1x16x128xbf16>
    tpu.vector_store %arg5[%c0_14, %c0_15, %c0_16], %29 {strides = array<i32>} : memref<1x16x128xbf16, #tpu.memory_space<vmem>>, vector<1x16x128xbf16>,
    return
  }
  func.func @transform_0(%arg0: i32, %arg1: i32) -> (i32, i32, i32) {
    %c0_i32 = arith.constant 0 : i32
    %c0_i32_0 = arith.constant 0 : i32
    return %arg0, %c0_i32, %arg1 : i32, i32, i32
  }
  func.func @transform_1(%arg0: i32, %arg1: i32) -> (i32, i32, i32) {
    %c0_i32 = arith.constant 0 : i32
    %c0_i32_0 = arith.constant 0 : i32
    %c0_i32_1 = arith.constant 0 : i32
    return %c0_i32, %c0_i32_0, %arg1 : i32, i32, i32
  }
  func.func @transform_2(%arg0: i32, %arg1: i32) -> (i32, i32, i32) {
    %c0_i32 = arith.constant 0 : i32
    %c0_i32_0 = arith.constant 0 : i32
    %c0_i32_1 = arith.constant 0 : i32
    return %c0_i32, %c0_i32_0, %arg1 : i32, i32, i32
  }
  func.func @transform_3(%arg0: i32, %arg1: i32) -> (i32, i32, i32) {
    %c0_i32 = arith.constant 0 : i32
    %c0_i32_0 = arith.constant 0 : i32
    return %arg0, %c0_i32, %arg1 : i32, i32, i32
  }
}

module attributes {stable_mosaic.version = 11 : i64} {
  func.func @_conv_s2k4_kernel(%arg0: i32, %arg1: i32, %arg2: memref<1x2x512xf32, #tpu.memory_space<vmem>>, %arg3: memref<1x2x512xf32, #tpu.memory_space<vmem>>, %arg4: memref<4x512x128xf32, #tpu.memory_space<vmem>>, %arg5: memref<1x128xf32, #tpu.memory_space<vmem>>, %arg6: memref<1x1x128xf32, #tpu.memory_space<vmem>>) attributes {dimension_semantics = [#tpu.dimension_semantics<parallel>, #tpu.dimension_semantics<parallel>], iteration_bounds = array<i64: 2, 1>, scalar_prefetch = 0 : i64, scratch_operands = 0 : i64, tpu.core_type = #tpu.core_type<tc>, window_params = [{transform_indices = @transform_0, window_bounds = array<i64: 1, 2, 512>}, {transform_indices = @transform_1, window_bounds = array<i64: 1, 2, 512>}, {transform_indices = @transform_2, window_bounds = array<i64: 4, 512, 128>}, {transform_indices = @transform_3, window_bounds = array<i64: 1, 128>}, {transform_indices = @transform_4, window_bounds = array<i64: 1, 1, 128>}]} {
    %c0 = arith.constant 0 : index
    %c0_0 = arith.constant 0 : index
    %c0_1 = arith.constant 0 : index
    %0 = vector.load %arg2[%c0, %c0_0, %c0_1] : memref<1x2x512xf32, #tpu.memory_space<vmem>>, vector<1x2x512xf32>
    %1 = vector.shape_cast %0 : vector<1x2x512xf32> to vector<2x512xf32>
    %c0_2 = arith.constant 0 : index
    %c0_3 = arith.constant 0 : index
    %c0_4 = arith.constant 0 : index
    %2 = vector.load %arg3[%c0_2, %c0_3, %c0_4] : memref<1x2x512xf32, #tpu.memory_space<vmem>>, vector<1x2x512xf32>
    %3 = vector.shape_cast %2 : vector<1x2x512xf32> to vector<2x512xf32>
    %4 = vector.extract_strided_slice %1 {offsets = [0, 0], sizes = [1, 512], strides = [1, 1]} : vector<2x512xf32> to vector<1x512xf32>
    %c0_5 = arith.constant 0 : index
    %c0_6 = arith.constant 0 : index
    %c0_7 = arith.constant 0 : index
    %5 = vector.load %arg4[%c0_5, %c0_6, %c0_7] : memref<4x512x128xf32, #tpu.memory_space<vmem>>, vector<1x512x128xf32>
    %6 = vector.shape_cast %5 : vector<1x512x128xf32> to vector<512x128xf32>
    %cst = arith.constant dense<0.000000e+00> : vector<1x128xf32>
    %7 = tpu.matmul %4, %6, %cst {dimension_numbers = #tpu.dot_dimension_numbers<[1], [0], [0], [1], [0, 0, 1, 1], [], []>} : vector<1x512xf32>, vector<512x128xf32>, vector<1x128xf32> -> vector<1x128xf32>
    %8 = vector.extract_strided_slice %1 {offsets = [1, 0], sizes = [1, 512], strides = [1, 1]} : vector<2x512xf32> to vector<1x512xf32>
    %c1 = arith.constant 1 : index
    %c0_8 = arith.constant 0 : index
    %c0_9 = arith.constant 0 : index
    %9 = vector.load %arg4[%c1, %c0_8, %c0_9] : memref<4x512x128xf32, #tpu.memory_space<vmem>>, vector<1x512x128xf32>
    %10 = vector.shape_cast %9 : vector<1x512x128xf32> to vector<512x128xf32>
    %cst_10 = arith.constant dense<0.000000e+00> : vector<1x128xf32>
    %11 = tpu.matmul %8, %10, %cst_10 {dimension_numbers = #tpu.dot_dimension_numbers<[1], [0], [0], [1], [0, 0, 1, 1], [], []>} : vector<1x512xf32>, vector<512x128xf32>, vector<1x128xf32> -> vector<1x128xf32>
    %12 = arith.addf %7, %11 : vector<1x128xf32>
    %13 = vector.extract_strided_slice %3 {offsets = [0, 0], sizes = [1, 512], strides = [1, 1]} : vector<2x512xf32> to vector<1x512xf32>
    %c2 = arith.constant 2 : index
    %c0_11 = arith.constant 0 : index
    %c0_12 = arith.constant 0 : index
    %14 = vector.load %arg4[%c2, %c0_11, %c0_12] : memref<4x512x128xf32, #tpu.memory_space<vmem>>, vector<1x512x128xf32>
    %15 = vector.shape_cast %14 : vector<1x512x128xf32> to vector<512x128xf32>
    %cst_13 = arith.constant dense<0.000000e+00> : vector<1x128xf32>
    %16 = tpu.matmul %13, %15, %cst_13 {dimension_numbers = #tpu.dot_dimension_numbers<[1], [0], [0], [1], [0, 0, 1, 1], [], []>} : vector<1x512xf32>, vector<512x128xf32>, vector<1x128xf32> -> vector<1x128xf32>
    %17 = arith.addf %12, %16 : vector<1x128xf32>
    %18 = vector.extract_strided_slice %3 {offsets = [1, 0], sizes = [1, 512], strides = [1, 1]} : vector<2x512xf32> to vector<1x512xf32>
    %c3 = arith.constant 3 : index
    %c0_14 = arith.constant 0 : index
    %c0_15 = arith.constant 0 : index
    %19 = vector.load %arg4[%c3, %c0_14, %c0_15] : memref<4x512x128xf32, #tpu.memory_space<vmem>>, vector<1x512x128xf32>
    %20 = vector.shape_cast %19 : vector<1x512x128xf32> to vector<512x128xf32>
    %cst_16 = arith.constant dense<0.000000e+00> : vector<1x128xf32>
    %21 = tpu.matmul %18, %20, %cst_16 {dimension_numbers = #tpu.dot_dimension_numbers<[1], [0], [0], [1], [0, 0, 1, 1], [], []>} : vector<1x512xf32>, vector<512x128xf32>, vector<1x128xf32> -> vector<1x128xf32>
    %22 = arith.addf %17, %21 : vector<1x128xf32>
    %c0_17 = arith.constant 0 : index
    %c0_18 = arith.constant 0 : index
    %23 = vector.load %arg5[%c0_17, %c0_18] : memref<1x128xf32, #tpu.memory_space<vmem>>, vector<1x128xf32>
    %24 = arith.addf %22, %23 : vector<1x128xf32>
    %c0_19 = arith.constant 0 : index
    %c0_20 = arith.constant 0 : index
    %c0_21 = arith.constant 0 : index
    %25 = vector.load %arg6[%c0_19, %c0_20, %c0_21] : memref<1x1x128xf32, #tpu.memory_space<vmem>>, vector<1x1x128xf32>
    %26 = vector.shape_cast %25 : vector<1x1x128xf32> to vector<1x128xf32>
    %27 = vector.shape_cast %24 : vector<1x128xf32> to vector<1x1x128xf32>
    tpu.vector_store %arg6[%c0_19, %c0_20, %c0_21], %27 {strides = array<i32>} : memref<1x1x128xf32, #tpu.memory_space<vmem>>, vector<1x1x128xf32>,
    return
  }
  func.func @transform_0(%arg0: i32, %arg1: i32) -> (i32, i32, i32) {
    %c0_i32 = arith.constant 0 : i32
    %c0_i32_0 = arith.constant 0 : i32
    %c0_i32_1 = arith.constant 0 : i32
    return %arg0, %c0_i32, %c0_i32_0 : i32, i32, i32
  }
  func.func @transform_1(%arg0: i32, %arg1: i32) -> (i32, i32, i32) {
    %c0_i32 = arith.constant 0 : i32
    %c0_i32_0 = arith.constant 0 : i32
    %c0_i32_1 = arith.constant 0 : i32
    return %arg0, %c0_i32, %c0_i32_0 : i32, i32, i32
  }
  func.func @transform_2(%arg0: i32, %arg1: i32) -> (i32, i32, i32) {
    %c0_i32 = arith.constant 0 : i32
    %c0_i32_0 = arith.constant 0 : i32
    %c0_i32_1 = arith.constant 0 : i32
    return %c0_i32, %c0_i32_0, %arg1 : i32, i32, i32
  }
  func.func @transform_3(%arg0: i32, %arg1: i32) -> (i32, i32) {
    %c0_i32 = arith.constant 0 : i32
    %c0_i32_0 = arith.constant 0 : i32
    return %c0_i32, %arg1 : i32, i32
  }
  func.func @transform_4(%arg0: i32, %arg1: i32) -> (i32, i32, i32) {
    %c0_i32 = arith.constant 0 : i32
    %c0_i32_0 = arith.constant 0 : i32
    return %arg0, %c0_i32, %arg1 : i32, i32, i32
  }
}

</mosaic_0001>

<bundles_post_ra>
// kernel: critic_forward.4
= control target key start
LH: loop header
LB: loop body
LE: loop exit
PB: predicated region body
PF: predicated region fallthrough
CT: control target
= control target key end

     0   :  { %s1170_s15 = smov 0   ;;  %s1172_s16 = smov 0   ;;  %s1258_s0 = inlined_call_operand.vmem [shape: bf16[2,72,16], index: 0, kind: input, shape index: {}]   ;;  %s1259_s1 = inlined_call_operand.vmem [shape: bf16[2,72,16], index: 1, kind: input, shape index: {}]   ;;  %s1260_s2 = inlined_call_operand.vmem [shape: bf16[4,16,128], index: 2, kind: input, shape index: {}]   ;;  %s1261_s3 = inlined_call_operand.vmem [shape: f32[1,128], index: 3, kind: input, shape index: {}]   ;;  %s1262_s4 = inlined_call_operand.vmem [shape: bf16[2,64,128], index: 4, kind: output, shape index: {}]  }
   0x1   :  { %s1174_s17 = smov 0  }
   0x2 LB: > { %s26_s18 = sadd.s32 1, %s1139_s16  ;;  %p902_p0 = scmp.ge.s32.totalorder %s1143_s17, 1  ;;  %s1143_s17 = sphi %s1174_s17, %s14_s17   ;;  %s1139_s16 = sphi %s1172_s16, %s1264_s16   ;;  %s1135_s15 = sphi %s1170_s15, %s1263_s15  }
   0x3   : > { %p28_p1 = scmp.ge.s32.totalorder %s26_s18, 2  ;;  %p203_p2 = scmp.lt.s32.totalorder %s1143_s17, 3 }
   0x5   : > { %s1266_s18 = smov (%p28_p1, %s26_s18), 0  ;;  %p204_p3 = pnand %p902_p0, %p203_p2 }
   0x6   : > { %v1101_v0 = vld [vmem:[%s1260_s2 + $0x8] sm:$0xff] (!%p204_p3)   ;;  %p244_p4 = scmp.lt.s32.totalorder (!%p204_p3), %s1135_s15, 1  ;;  %v1102_v1 = vld [vmem:[%s1260_s2 + $0x10] sm:$0xff] (!%p204_p3)   ;;  %v1107_v2 = vld [vmem:[%s1260_s2] sm:$0xff] (!%p204_p3)   ;;  %vm319_vm0 = vcmask (!%p204_p3), 130048  }
   0x7   : > { %207 = sbr.rel (%p204_p3) target bundleno = 272 (0x110), region = 36  ;;  %1012 = vmatprep.subr.bf16.mxu1 (!%p204_p3), %v1101_v0  ;;  %1032 = vmatprep.subr.bf16.mxu0 (!%p204_p3), %v1102_v1  ;;  %v1112_v3 = vld [vmem:[%s1260_s2 + $0x18] sm:$0xff] (!%p204_p3)   ;;  %v949_v41 = vld [vmem:[%s1261_s3] ss:$0 sm:$0xff] (!%p204_p3) }
   0x8   : > { %1013 = vmatpush3.bf16.msra.mxu1 (!%p204_p3), %v1101_v0  ;;  %1033 = vmatpush3.bf16.msra.mxu0 (!%p204_p3), %v1102_v1 }
   0x9   : > { %1022 = vmatprep.subr.bf16.mxu1 (!%p204_p3), %v1107_v2  ;;  %1042 = vmatprep.subr.bf16.mxu0 (!%p204_p3), %v1112_v3 }
   0xe   : > { %s1268_s15 = smov (!%p244_p4, %s1135_s15), 1 }
   0xf   : > { %s1076_s27 = smul.u32 36, %s1268_s15  ;;  %s960_s10 = sshll.u32 %s1268_s15, 5 }
  0x10   : > { %s1243_s13 = scalar_lea.vmem %s1262_s4, %s960_s10 }
  0x11   : > { %s248_s30 = scalar_lea.vmem %s1258_s0, %s1076_s27  ;;  %s1209_s7 = scalar_lea.vmem %s1259_s1, %s1076_s27 }
  0x12   : > { %v271_v4 = vld [vmem:[%s248_s30 + $0x4] sm:$0xf]  ;;  %v272_v5 = vld [vmem:[%s248_s30 + $0x8] sm:$0xf]  ;;  %v273_v6 = vld [vmem:[%s248_s30 + $0xc] sm:$0xf] }
  0x13   : > { %v274_v7 = vld [vmem:[%s248_s30 + $0x10] sm:$0xf]  ;;  %v909_v8 = vcombine.low %v271_v4, %v272_v5  ;;  %v279_v9 = vld [vmem:[%s1209_s7] sm:$0xf]  ;;  %v280_v11 = vld [vmem:[%s1209_s7 + $0x4] sm:$0xf]  ;;  %v919_v31 = vcombine.low %v272_v5, %v273_v6 }
  0x14   : > { %v910_v10 = vcombine.low %v273_v6, %v274_v7  ;;  %v281_v12 = vld [vmem:[%s1209_s7 + $0x8] sm:$0xf]  ;;  %v282_v13 = vld [vmem:[%s1209_s7 + $0xc] sm:$0xf]  ;;  %v283_v14 = vld [vmem:[%s1209_s7 + $0x10] sm:$0xf]  ;;  %v929_v15 = vcombine.low %v279_v9, %v280_v11 }
  0x15   : > { %1014 = vmatprep.mubr.msk.bf16.mxu1 %vm319_vm0, %v909_v8  ;;  %v930_v16 = vcombine.low %v281_v12, %v282_v13  ;;  %v275_v17 = vld [vmem:[%s248_s30 + $0x14] sm:$0xf]  ;;  %v276_v18 = vld [vmem:[%s248_s30 + $0x18] sm:$0xf]  ;;  %v277_v22 = vld [vmem:[%s248_s30 + $0x1c] sm:$0xf]  ;;  %v940_v30 = vcombine.low %v280_v11, %v281_v12  ;;  %v941_v33 = vcombine.low %v282_v13, %v283_v14 }
  0x16   : > { %1015 = vmatmul.mubr.msk.bf16.vlgmr.msra.gmra.mrb[0].mxu1 %vm319_vm0, %v910_v10  ;;  %v911_v19 = vcombine.low %v275_v17, %v276_v18  ;;  %v284_v20 = vld [vmem:[%s1209_s7 + $0x14] sm:$0xf]  ;;  %1034 = vmatprep.mubr.msk.bf16.mxu0 %vm319_vm0, %v929_v15  ;;  %v278_v23 = vld [vmem:[%s248_s30 + $0x20] sm:$0xf]  ;;  %v285_v25 = vld [vmem:[%s1209_s7 + $0x18] sm:$0xf]  ;;  %v920_v32 = vcombine.low %v274_v7, %v275_v17  ;;  %v921_v36 = vcombine.low %v276_v18, %v277_v22 }
  0x17   : > { %1023 = vmatpush3.bf16.msra.mxu1 %v1107_v2  ;;  %v931_v21 = vcombine.low %v283_v14, %v284_v20  ;;  %v270_v24 = vld [vmem:[%s248_s30] sm:$0xf]  ;;  %1035 = vmatmul.mubr.msk.bf16.vlgmr.msra.gmra.mrb[0].mxu0 %vm319_vm0, %v930_v16  ;;  %v286_v26 = vld [vmem:[%s1209_s7 + $0x1c] sm:$0xf]  ;;  %v912_v27 = vcombine.low %v277_v22, %v278_v23  ;;  %v942_v34 = vcombine.low %v284_v20, %v285_v25 }
  0x18   : > { %1018 = vmatprep.mubr.msk.bf16.mxu1 %vm319_vm0, %v911_v19  ;;  %1043 = vmatpush3.bf16.msra.mxu0 %v1112_v3  ;;  %v918_v28 = vcombine.low %v270_v24, %v271_v4  ;;  %v932_v29 = vcombine.low %v285_v25, %v286_v26  ;;  %v287_v35 = vld [vmem:[%s1209_s7 + $0x20] sm:$0xf] }
  0x19   : > { %1038 = vmatprep.mubr.msk.bf16.mxu0 %vm319_vm0, %v931_v21  ;;  %v943_v37 = vcombine.low %v286_v26, %v287_v35 }
  0x1e   : > { %1019 = vmatmul.mubr.msk.bf16.gmra.mrb[4].mxu1 %vm319_vm0, %v912_v27 }
  0x1f   : > { %1024 = vmatprep.mubr.msk.bf16.mxu1 %vm319_vm0, %v918_v28  ;;  %1039 = vmatmul.mubr.msk.bf16.gmra.mrb[4].mxu0 %vm319_vm0, %v932_v29 }
  0x20   : > { %1044 = vmatprep.mubr.msk.bf16.mxu0 %vm319_vm0, %v940_v30 }
  0x26   : > { %1025 = vmatmul.mubr.msk.bf16.vlgmr.msra.gmra.mrb[0].mxu1 %vm319_vm0, %v919_v31 }
  0x27   : > { %1028 = vmatprep.mubr.msk.bf16.mxu1 %vm319_vm0, %v920_v32  ;;  %1045 = vmatmul.mubr.msk.bf16.vlgmr.msra.gmra.mrb[0].mxu0 %vm319_vm0, %v941_v33 }
  0x28   : > { %1048 = vmatprep.mubr.msk.bf16.mxu0 %vm319_vm0, %v942_v34 }
  0x2e   : > { %1029 = vmatmul.mubr.msk.bf16.gmra.mrb[4].mxu1 %vm319_vm0, %v921_v36 }
  0x2f   : > { %1049 = vmatmul.mubr.msk.bf16.gmra.mrb[4].mxu0 %vm319_vm0, %v943_v37 }
  0xf9   : > { %v1026_v38 = vpop.f32.mrb[0].mxu1 }
  0xfa   : > { %v455_v39 = vpop.f32.mrb[1].mxu1  ;;  %v1046_v40 = vpop.f32.mrb[0].mxu0 }
  0xfb   : > { %v1027_v42 = vpop.f32.mrb[2].mxu1  ;;  %v1052_v43 = vadd.f32 %v1046_v40, %v1026_v38  ;;  %v661_v44 = vpop.f32.mrb[1].mxu0 }
  0xfc   : > { %v458_v45 = vpop.f32.mrb[3].mxu1  ;;  %v1053_v46 = vadd.f32 %v661_v44, %v455_v39  ;;  %v1047_v47 = vpop.f32.mrb[2].mxu0 }
  0xfd   : > { %v709_v48 = vadd.f32 %v1052_v43, %v949_v41  ;;  %v1054_v49 = vadd.f32 %v1047_v47, %v1027_v42  ;;  %v664_v50 = vpop.f32.mrb[3].mxu0 }
  0xfe   : > { %v707_v51 = vadd.f32 %v1053_v46, %v949_v41  ;;  %v1055_v52 = vadd.f32 %v664_v50, %v458_v45 }
  0xff   : > { %v725_v53 = vmul.f32 0.2, %v709_v48  ;;  %v710_v54 = vadd.f32 %v1054_v49, %v949_v41  ;;  %vm717_vm1 = vcmp.ge.f32.partialorder %v709_v48, 0.0 }
 0x100   : > { %v723_v55 = vmul.f32 0.2, %v707_v51  ;;  %v708_v56 = vadd.f32 %v1055_v52, %v949_v41  ;;  %vm715_vm2 = vcmp.ge.f32.partialorder %v707_v51, 0.0 }
 0x101   : > { %v1030_v57 = vpop.f32.mrb[4].mxu1  ;;  %vm718_vm3 = vcmp.ge.f32.partialorder %v710_v54, 0.0  ;;  %v726_v58 = vmul.f32 0.2, %v710_v54  ;;  %v733_v63 = vsel %vm717_vm1, %v709_v48, %v725_v53 }
 0x102   : > { %v471_v59 = vpop.f32.mrb[5].mxu1  ;;  %vm716_vm4 = vcmp.ge.f32.partialorder %v708_v56, 0.0  ;;  %v724_v60 = vmul.f32 0.2, %v708_v56  ;;  %v1050_v61 = vpop.f32.mrb[4].mxu0  ;;  %v731_v4 = vsel %vm715_vm2, %v707_v51, %v723_v55 }
 0x103   : > { %v1031_v62 = vpop.f32.mrb[6].mxu1  ;;  %v734_v0 = vsel %vm718_vm3, %v710_v54, %v726_v58  ;;  %v1056_v1 = vadd.f32 %v1050_v61, %v1030_v57  ;;  %v677_v2 = vpop.f32.mrb[5].mxu0 }
 0x104   : > { %v474_v3 = vpop.f32.mrb[7].mxu1  ;;  %v977_v5 = vpack.c.bf16 %v734_v0, %v733_v63  ;;  %v732_v6 = vsel %vm716_vm4, %v708_v56, %v724_v60  ;;  %v1057_v7 = vadd.f32 %v677_v2, %v471_v59  ;;  %v1051_v8 = vpop.f32.mrb[6].mxu0 }
 0x105   : > { %v972_v9 = vpack.c.bf16 %v732_v6, %v731_v4  ;;  %v713_v10 = vadd.f32 %v1056_v1, %v949_v41  ;;  %v1058_v11 = vadd.f32 %v1051_v8, %v1031_v62  ;;  %v680_v12 = vpop.f32.mrb[7].mxu0 }
 0x106   : > { %989 = vst [vmem:[%s1243_s13 + $0x8] sm:$0xff] %v977_v5   ;;  %v711_v13 = vadd.f32 %v1057_v7, %v949_v41  ;;  %v1059_v14 = vadd.f32 %v680_v12, %v474_v3 }
 0x107   : > { %973 = vst [vmem:[%s1243_s13] sm:$0xff] %v972_v9   ;;  %v729_v15 = vmul.f32 0.2, %v713_v10  ;;  %v714_v16 = vadd.f32 %v1058_v11, %v949_v41  ;;  %vm721_vm5 = vcmp.ge.f32.partialorder %v713_v10, 0.0 }
 0x108   : > { %v727_v17 = vmul.f32 0.2, %v711_v13  ;;  %v712_v18 = vadd.f32 %v1059_v14, %v949_v41  ;;  %vm719_vm6 = vcmp.ge.f32.partialorder %v711_v13, 0.0 }
 0x109   : > { %vm722_vm7 = vcmp.ge.f32.partialorder %v714_v16, 0.0  ;;  %v730_v19 = vmul.f32 0.2, %v714_v16  ;;  %v737_v21 = vsel %vm721_vm5, %v713_v10, %v729_v15 }
 0x10a   : > { %vm720_vm8 = vcmp.ge.f32.partialorder %v712_v18, 0.0  ;;  %v728_v20 = vmul.f32 0.2, %v712_v18  ;;  %v735_v23 = vsel %vm719_vm6, %v711_v13, %v727_v17 }
 0x10b   : > { %v738_v22 = vsel %vm722_vm7, %v714_v16, %v730_v19 }
 0x10c   : > { %v987_v24 = vpack.c.bf16 %v738_v22, %v737_v21  ;;  %v736_v25 = vsel %vm720_vm8, %v712_v18, %v728_v20 }
 0x10d   : > { %v982_v26 = vpack.c.bf16 %v736_v25, %v735_v23 }
 0x10e   : > { %991 = vst [vmem:[%s1243_s13 + $0x18] sm:$0xff] %v987_v24  }
 0x10f   : > { %990 = vst [vmem:[%s1243_s13 + $0x10] sm:$0xff] %v982_v26  }
 0x110 PF: > { %s14_s17 = sadd.s32 1, %s1143_s17   ;;  %s1263_s15 = smov %s1139_s16 }
 0x111   : > { %p11_p5 = scmp.ge.s32.totalorder %s14_s17, 4   ;;  %s1264_s16 = smov %s1266_s18 }
 0x113   :  { %13 = sbr.rel (!%p11_p5) target bundleno = 2 (0x2), region = 78 }

// kernel: critic_forward.6
= control target key start
LH: loop header
LB: loop body
LE: loop exit
PB: predicated region body
PF: predicated region fallthrough
CT: control target
= control target key end

     0   :  { %s501_s12 = smov 0   ;;  %s503_s13 = smov 0   ;;  %s547_s0 = inlined_call_operand.vmem [shape: bf16[2,16,128], index: 0, kind: input, shape index: {}]   ;;  %s548_s1 = inlined_call_operand.vmem [shape: f32[1,1,128], index: 1, kind: input, shape index: {}]   ;;  %s549_s2 = inlined_call_operand.vmem [shape: f32[1,1,128], index: 2, kind: input, shape index: {}]   ;;  %s550_s3 = inlined_call_operand.vmem [shape: bf16[2,16,128], index: 3, kind: output, shape index: {}]  }
   0x1   :  { %s505_s14 = smov 0  }
   0x2 LB: > { %s25_s15 = sadd.s32 1, %s475_s13  ;;  %p407_p0 = scmp.ge.s32.totalorder %s479_s14, 1  ;;  %s479_s14 = sphi %s505_s14, %s13_s14   ;;  %s475_s13 = sphi %s503_s13, %s552_s13   ;;  %s471_s12 = sphi %s501_s12, %s551_s12  }
   0x3   : > { %p27_p1 = scmp.ge.s32.totalorder %s25_s15, 2  ;;  %p172_p2 = scmp.lt.s32.totalorder %s479_s14, 3 }
   0x5   : > { %s554_s15 = smov (%p27_p1, %s25_s15), 0  ;;  %p173_p3 = pnand %p407_p0, %p172_p2 }
   0x6   : > { %p208_p4 = scmp.lt.s32.totalorder (!%p173_p3), %s471_s12, 1  ;;  %v412_v25 = vld [vmem:[%s548_s1] ss:$0 sm:$0xff] (!%p173_p3) }
   0x7   : > { %176 = sbr.rel (%p173_p3) target bundleno = 81 (0x51), region = 32  ;;  %v413_v28 = vld [vmem:[%s549_s2] ss:$0 sm:$0xff] (!%p173_p3) }
   0xe   : > { %s556_s12 = smov (!%p208_p4, %s471_s12), 1 }
   0xf   : > { %s418_s16 = sshll.u32 %s556_s12, 3 }
  0x10   : > { %s215_s19 = scalar_lea.vmem %s547_s0, %s418_s16  ;;  %s229_s26 = scalar_lea.vmem %s550_s3, %s418_s16 }
  0x11   : > { %v423_v0 = vld [vmem:[%s215_s19] sm:$0xff]  }
  0x12   : > { %v424_v1 = vunpack.c.l.bf16 %v423_v0  ;;  %v425_v2 = vunpack.c.h.bf16 %v423_v0 }
  0x14   : > { %v234_v3 = vadd.f32 %v425_v2, %v424_v1 }
  0x16   : > { %v235_v4 = vrot.slane %v234_v3, 4 }
  0x18   : > { %v236_v5 = vadd.f32 %v235_v4, %v234_v3 }
  0x1a   : > { %v237_v6 = vrot.slane %v236_v5, 2 }
  0x1c   : > { %v238_v7 = vadd.f32 %v237_v6, %v236_v5 }
  0x1e   : > { %v239_v8 = vrot.slane %v238_v7, 1 }
  0x20   : > { %v240_v9 = vadd.f32 %v239_v8, %v238_v7 }
  0x22   : > { %v242_v10 = vmul.f32 0.0625, %v240_v9 }
  0x24   : > { %v243_v11 = vsub.f32 %v424_v1, %v242_v10  ;;  %v244_v12 = vsub.f32 %v425_v2, %v242_v10 }
  0x26   : > { %v245_v13 = vmul.f32 %v243_v11, %v243_v11  ;;  %v246_v14 = vmul.f32 %v244_v12, %v244_v12 }
  0x28   : > { %v247_v15 = vadd.f32 %v246_v14, %v245_v13 }
  0x2a   : > { %v248_v16 = vrot.slane %v247_v15, 4 }
  0x2c   : > { %v249_v17 = vadd.f32 %v248_v16, %v247_v15 }
  0x2e   : > { %v250_v18 = vrot.slane %v249_v17, 2 }
  0x30   : > { %v251_v19 = vadd.f32 %v250_v18, %v249_v17 }
  0x32   : > { %v252_v20 = vrot.slane %v251_v19, 1 }
  0x34   : > { %v253_v21 = vadd.f32 %v252_v20, %v251_v19 }
  0x36   : > { %v254_v22 = vmul.f32 0.0625, %v253_v21 }
  0x38   : > { %v255_v23 = vadd.f32 1e-05, %v254_v22 }
  0x3a   : > { %455 = vrsqrt.f32 %v255_v23 }
  0x44   : > { %v456_v24 = vpop.eup %455 }
  0x45   : > { %v257_v26 = vmul.f32 %v456_v24, %v243_v11  ;;  %v258_v27 = vmul.f32 %v456_v24, %v244_v12 }
  0x47   : > { %v266_v29 = vmul.f32 %v412_v25, %v257_v26  ;;  %v267_v30 = vmul.f32 %v412_v25, %v258_v27 }
  0x49   : > { %v275_v31 = vadd.f32 %v413_v28, %v266_v29  ;;  %v276_v32 = vadd.f32 %v413_v28, %v267_v30 }
  0x4b   : > { %vm277_vm0 = vcmp.ge.f32.partialorder %v275_v31, 0.0  ;;  %vm278_vm1 = vcmp.ge.f32.partialorder %v276_v32, 0.0  ;;  %v279_v33 = vmul.f32 0.2, %v275_v31  ;;  %v280_v34 = vmul.f32 0.2, %v276_v32 }
  0x4d   : > { %v281_v35 = vsel %vm277_vm0, %v275_v31, %v279_v33  ;;  %v282_v36 = vsel %vm278_vm1, %v276_v32, %v280_v34 }
  0x4e   : > { %v429_v37 = vpack.c.bf16 %v282_v36, %v281_v35 }
  0x50   : > { %430 = vst [vmem:[%s229_s26] sm:$0xff] %v429_v37  }
  0x51 PF: > { %s13_s14 = sadd.s32 1, %s479_s14   ;;  %s551_s12 = smov %s475_s13 }
  0x52   : > { %p10_p5 = scmp.ge.s32.totalorder %s13_s14, 4   ;;  %s552_s13 = smov %s554_s15 }
  0x54   :  { %12 = sbr.rel (!%p10_p5) target bundleno = 2 (0x2), region = 68 }

// kernel: critic_forward.5
= control target key start
LH: loop header
LB: loop body
LE: loop exit
PB: predicated region body
PF: predicated region fallthrough
CT: control target
= control target key end

     0   :  { %s2559_s12 = smov 0   ;;  %s2561_s13 = smov 0   ;;  %s3031_s0 = inlined_call_operand.vmem [shape: bf16[2,20,512], index: 0, kind: input, shape index: {}]   ;;  %s3032_s1 = inlined_call_operand.vmem [shape: bf16[2,20,512], index: 1, kind: input, shape index: {}]   ;;  %s3033_s2 = inlined_call_operand.vmem [shape: bf16[4,512,128], index: 2, kind: input, shape index: {}]   ;;  %s3034_s3 = inlined_call_operand.vmem [shape: bf16[2,16,128], index: 3, kind: output, shape index: {}]  }
   0x1   :  { %s2563_s14 = smov 0  }
   0x2 LB: > { %s25_s15 = sadd.s32 1, %s2533_s13  ;;  %p1813_p0 = scmp.ge.s32.totalorder %s2537_s14, 1  ;;  %s2537_s14 = sphi %s2563_s14, %s13_s14   ;;  %s2533_s13 = sphi %s2561_s13, %s3036_s13   ;;  %s2529_s12 = sphi %s2559_s12, %s3035_s12  }
   0x3   : > { %p27_p1 = scmp.ge.s32.totalorder %s25_s15, 2  ;;  %p170_p2 = scmp.lt.s32.totalorder %s2537_s14, 3 }
   0x5   : > { %s3038_s15 = smov (%p27_p1, %s25_s15), 0  ;;  %p171_p3 = pnand %p1813_p0, %p170_p2 }
   0x6   : > { %v2367_v0 = vld [vmem:[%s3033_s2 + $0x140] sm:$0xff] (!%p171_p3)   ;;  %v2371_v4 = vld [vmem:[%s3033_s2 + $0x148] sm:$0xff] (!%p171_p3)   ;;  %v2375_v8 = vld [vmem:[%s3033_s2 + $0x150] sm:$0xff] (!%p171_p3)   ;;  %p206_p4 = scmp.lt.s32.totalorder (!%p171_p3), %s2529_s12, 1  ;;  %vm396_vm0 = vcmask (!%p171_p3), 1045504  }
   0x7   : > { %174 = sbr.rel (%p171_p3) target bundleno = 361 (0x169), region = 32  ;;  %v2368_v1 = vld [vmem:[%s3033_s2 + $0x1c0] sm:$0xff] (!%p171_p3)   ;;  %2166 = vmatprep.subr.bf16.mxu0 (!%p171_p3), %v2367_v0  ;;  %v2372_v5 = vld [vmem:[%s3033_s2 + $0x1c8] sm:$0xff] (!%p171_p3)   ;;  %v2376_v9 = vld [vmem:[%s3033_s2 + $0x1d0] sm:$0xff] (!%p171_p3)  }
   0x8   : > { %v2369_v2 = vld [vmem:[%s3033_s2 + $0x100] sm:$0xff] (!%p171_p3)   ;;  %2188 = vmatprep.subr.bf16.mxu1 (!%p171_p3), %v2368_v1  ;;  %v2373_v6 = vld [vmem:[%s3033_s2 + $0x108] sm:$0xff] (!%p171_p3)   ;;  %v2377_v10 = vld [vmem:[%s3033_s2 + $0x110] sm:$0xff] (!%p171_p3)  }
   0x9   : > { %v2370_v3 = vld [vmem:[%s3033_s2 + $0x180] sm:$0xff] (!%p171_p3)   ;;  %2167 = vmatpush3.bf16.msra.mxu0 (!%p171_p3), %v2369_v2  ;;  %v2374_v7 = vld [vmem:[%s3033_s2 + $0x188] sm:$0xff] (!%p171_p3)   ;;  %v2378_v11 = vld [vmem:[%s3033_s2 + $0x190] sm:$0xff] (!%p171_p3)  }
   0xa   : > { %2189 = vmatpush3.bf16.msra.mxu1 (!%p171_p3), %v2370_v3  ;;  %2168 = vmatprep.subr.bf16.mxu0 (!%p171_p3), %v2371_v4  ;;  %v2379_v12 = vld [vmem:[%s3033_s2 + $0x158] sm:$0xff] (!%p171_p3)   ;;  %v2383_v16 = vld [vmem:[%s3033_s2 + $0x160] sm:$0xff] (!%p171_p3)   ;;  %v2387_v20 = vld [vmem:[%s3033_s2 + $0x168] sm:$0xff] (!%p171_p3)  }
   0xb   : > { %2190 = vmatprep.subr.bf16.mxu1 (!%p171_p3), %v2372_v5  ;;  %v2380_v13 = vld [vmem:[%s3033_s2 + $0x1d8] sm:$0xff] (!%p171_p3)   ;;  %v2384_v17 = vld [vmem:[%s3033_s2 + $0x1e0] sm:$0xff] (!%p171_p3)   ;;  %v2388_v21 = vld [vmem:[%s3033_s2 + $0x1e8] sm:$0xff] (!%p171_p3)  }
   0xc   : > { %v2381_v14 = vld [vmem:[%s3033_s2 + $0x118] sm:$0xff] (!%p171_p3)   ;;  %v2385_v18 = vld [vmem:[%s3033_s2 + $0x120] sm:$0xff] (!%p171_p3)   ;;  %v2389_v22 = vld [vmem:[%s3033_s2 + $0x128] sm:$0xff] (!%p171_p3)  }
   0xd   : > { %2169 = vmatpush3.bf16.msra.mxu0 (!%p171_p3), %v2373_v6  ;;  %v2382_v15 = vld [vmem:[%s3033_s2 + $0x198] sm:$0xff] (!%p171_p3)   ;;  %v2386_v19 = vld [vmem:[%s3033_s2 + $0x1a0] sm:$0xff] (!%p171_p3)   ;;  %v2390_v23 = vld [vmem:[%s3033_s2 + $0x1a8] sm:$0xff] (!%p171_p3)  }
   0xe   : > { %2191 = vmatpush3.bf16.msra.mxu1 %v2374_v7  ;;  %2170 = vmatprep.subr.bf16.mxu0 %v2375_v8  ;;  %s3040_s12 = smov (!%p206_p4, %s2529_s12), 1  ;;  %v2391_v24 = vld [vmem:[%s3033_s2 + $0x170] sm:$0xff]   ;;  %v2395_v28 = vld [vmem:[%s3033_s2 + $0x178] sm:$0xff]   ;;  %v2409_v44 = vld [vmem:[%s3033_s2 + $0x40] sm:$0xff]  }
   0xf   : > { %2192 = vmatprep.subr.bf16.mxu1 %v2376_v9  ;;  %v2392_v25 = vld [vmem:[%s3033_s2 + $0x1f0] sm:$0xff]   ;;  %s2342_s22 = smul.u32 48, %s3040_s12  ;;  %v2396_v29 = vld [vmem:[%s3033_s2 + $0x1f8] sm:$0xff]   ;;  %v2410_v53 = vld [vmem:[%s3033_s2 + $0xc0] sm:$0xff]  }
  0x10   : > { %v2393_v26 = vld [vmem:[%s3033_s2 + $0x130] sm:$0xff]   ;;  %v2397_v30 = vld [vmem:[%s3033_s2 + $0x138] sm:$0xff]   ;;  %v2411_v55 = vld [vmem:[%s3033_s2] sm:$0xff]  }
  0x11   : > { %2171 = vmatpush3.bf16.msra.mxu0 %v2377_v10  ;;  %v2394_v27 = vld [vmem:[%s3033_s2 + $0x1b0] sm:$0xff]   ;;  %s210_s6 = scalar_lea.vmem %s3031_s0, %s2342_s22  ;;  %v2398_v31 = vld [vmem:[%s3033_s2 + $0x1b8] sm:$0xff]   ;;  %v2412_v57 = vld [vmem:[%s3033_s2 + $0x80] sm:$0xff]   ;;  %s2888_s5 = scalar_lea.vmem %s3032_s1, %s2342_s22 }
  0x12   : > { %2193 = vmatpush3.bf16.msra.mxu1 %v2378_v11  ;;  %2172 = vmatprep.subr.bf16.mxu0 %v2379_v12  ;;  %v233_v32 = vld [vmem:[%s210_s6 + $0x20] sm:$0x33]  ;;  %v234_v36 = vld [vmem:[%s210_s6 + $0x28] sm:$0x33]  ;;  %v2417_v62 = vld [vmem:[%s3033_s2 + $0x50] sm:$0xff]  }
  0x13   : > { %2194 = vmatprep.subr.bf16.mxu1 %v2380_v13  ;;  %v2399_v33 = vld [vmem:[%s210_s6 + $0x4] ss:$16 sps:$4 sm:$0xff]   ;;  %v1887_v34 = vcombine.high %v233_v32, %v233_v32  ;;  %v1886_v35 = vcombine.low %v233_v32, %v233_v32  ;;  %v2402_v37 = vld [vmem:[%s210_s6 + $0xc] ss:$16 sps:$4 sm:$0xff]   ;;  %v2685_v38 = vld [vmem:[%s210_s6] ss:$16 sps:$4 sm:$0xff]   ;;  %v1889_v41 = vcombine.high %v234_v36, %v234_v36  ;;  %v1888_v47 = vcombine.low %v234_v36, %v234_v36 }
  0x14   : > { %v400_v39 = vrot.slane %v2399_v33, 2  ;;  %v2687_v43 = vld [vmem:[%s210_s6 + $0x8] ss:$16 sps:$4 sm:$0xff]   ;;  %v406_v45 = vrot.slane %v2402_v37, 2  ;;  %v397_v46 = vrot.slane %v2685_v38, 2  ;;  %v2418_v63 = vld [vmem:[%s3033_s2 + $0xd0] sm:$0xff]  }
  0x15   : > { %2173 = vmatpush3.bf16.msra.mxu0 %v2381_v14  ;;  %v401_v40 = vrot.slane %v1887_v34, 2  ;;  %v398_v42 = vrot.slane %v1886_v35, 2  ;;  %v407_v49 = vrot.slane %v1889_v41, 2  ;;  %v403_v50 = vrot.slane %v2687_v43, 2  ;;  %v2413_v58 = vld [vmem:[%s3033_s2 + $0x48] sm:$0xff]   ;;  %v2419_v0 = vld [vmem:[%s3033_s2 + $0x10] sm:$0xff]  }
  0x16   : > { %2195 = vmatpush3.bf16.msra.mxu1 %v2382_v15  ;;  %2174 = vmatprep.subr.bf16.mxu0 %v2383_v16  ;;  %v404_v52 = vrot.slane %v1888_v47, 2  ;;  %v2414_v59 = vld [vmem:[%s3033_s2 + $0xc8] sm:$0xff]   ;;  %v2420_v1 = vld [vmem:[%s3033_s2 + $0x90] sm:$0xff]   ;;  %v2421_v2 = vld [vmem:[%s3033_s2 + $0x58] sm:$0xff]  }
  0x17   : > { %2196 = vmatprep.subr.bf16.mxu1 %v2384_v17  ;;  %v402_v48 = vsel %vm396_vm0, %v400_v39, %v401_v40  ;;  %v399_v51 = vsel %vm396_vm0, %v397_v46, %v398_v42  ;;  %v408_v54 = vsel %vm396_vm0, %v406_v45, %v407_v49  ;;  %v2415_v60 = vld [vmem:[%s3033_s2 + $0x8] sm:$0xff]   ;;  %v2422_v3 = vld [vmem:[%s3033_s2 + $0xd8] sm:$0xff]   ;;  %v2425_v6 = vld [vmem:[%s3033_s2 + $0x60] sm:$0xff]  }
  0x18   : > { %637 = vmatprep.mubr.bf16.mxu0 %v402_v48  ;;  %678 = vmatprep.mubr.bf16.mxu1 %v408_v54  ;;  %v405_v56 = vsel %vm396_vm0, %v403_v50, %v404_v52  ;;  %v2416_v61 = vld [vmem:[%s3033_s2 + $0x88] sm:$0xff]   ;;  %v2423_v4 = vld [vmem:[%s3033_s2 + $0x18] sm:$0xff]   ;;  %v2426_v7 = vld [vmem:[%s3033_s2 + $0xe0] sm:$0xff]  }
  0x19   : > { %2175 = vmatpush3.bf16.msra.mxu0 %v2385_v18  ;;  %v2424_v5 = vld [vmem:[%s3033_s2 + $0x98] sm:$0xff]   ;;  %v2427_v8 = vld [vmem:[%s3033_s2 + $0x20] sm:$0xff]   ;;  %v2429_v10 = vld [vmem:[%s3033_s2 + $0x68] sm:$0xff]  }
  0x1a   : > { %2197 = vmatpush3.bf16.msra.mxu1 %v2386_v19  ;;  %2176 = vmatprep.subr.bf16.mxu0 %v2387_v20  ;;  %v2428_v9 = vld [vmem:[%s3033_s2 + $0xa0] sm:$0xff]   ;;  %v2430_v11 = vld [vmem:[%s3033_s2 + $0xe8] sm:$0xff]   ;;  %v2433_v14 = vld [vmem:[%s3033_s2 + $0x70] sm:$0xff]  }
  0x1b   : > { %2198 = vmatprep.subr.bf16.mxu1 %v2388_v21  ;;  %v2431_v12 = vld [vmem:[%s3033_s2 + $0x28] sm:$0xff]   ;;  %v2434_v15 = vld [vmem:[%s3033_s2 + $0xf0] sm:$0xff]   ;;  %v2437_v18 = vld [vmem:[%s3033_s2 + $0x78] sm:$0xff]  }
  0x1c   : > { %v2432_v13 = vld [vmem:[%s3033_s2 + $0xa8] sm:$0xff]   ;;  %v2435_v16 = vld [vmem:[%s3033_s2 + $0x30] sm:$0xff]   ;;  %v2438_v19 = vld [vmem:[%s3033_s2 + $0xf8] sm:$0xff]  }
  0x1d   : > { %2177 = vmatpush3.bf16.msra.mxu0 %v2389_v22  ;;  %v2436_v17 = vld [vmem:[%s3033_s2 + $0xb0] sm:$0xff]   ;;  %v2439_v20 = vld [vmem:[%s3033_s2 + $0x38] sm:$0xff]   ;;  %v2441_v22 = vld [vmem:[%s3033_s2 + $0x240] sm:$0xff]  }
  0x1e   : > { %2199 = vmatpush3.bf16.msra.mxu1 %v2390_v23  ;;  %2178 = vmatprep.subr.bf16.mxu0 %v2391_v24  ;;  %v2440_v21 = vld [vmem:[%s3033_s2 + $0xb8] sm:$0xff]   ;;  %v2442_v23 = vld [vmem:[%s3033_s2 + $0x2c0] sm:$0xff]   ;;  %v2451_v32 = vld [vmem:[%s3033_s2 + $0x210] sm:$0xff]  }
  0x1f   : > { %2200 = vmatprep.subr.bf16.mxu1 %v2392_v25  ;;  %v2443_v24 = vld [vmem:[%s3033_s2 + $0x200] sm:$0xff]   ;;  %v2453_v34 = vld [vmem:[%s3033_s2 + $0x258] sm:$0xff]   ;;  %v2461_v42 = vld [vmem:[%s3033_s2 + $0x268] sm:$0xff]  }
  0x20   : > { %v2444_v25 = vld [vmem:[%s3033_s2 + $0x280] sm:$0xff]   ;;  %v2454_v35 = vld [vmem:[%s3033_s2 + $0x2d8] sm:$0xff]   ;;  %v2464_v45 = vld [vmem:[%s3033_s2 + $0x2a8] sm:$0xff]  }
  0x21   : > { %2179 = vmatpush3.bf16.msra.mxu0 %v2393_v26  ;;  %v2445_v26 = vld [vmem:[%s3033_s2 + $0x248] sm:$0xff]   ;;  %v2455_v36 = vld [vmem:[%s3033_s2 + $0x218] sm:$0xff]   ;;  %v2458_v39 = vld [vmem:[%s3033_s2 + $0x2e0] sm:$0xff]  }
  0x22   : > { %2201 = vmatpush3.bf16.msra.mxu1 %v2394_v27  ;;  %2180 = vmatprep.subr.bf16.mxu0 %v2395_v28  ;;  %v2446_v27 = vld [vmem:[%s3033_s2 + $0x2c8] sm:$0xff]   ;;  %v2459_v40 = vld [vmem:[%s3033_s2 + $0x220] sm:$0xff]   ;;  %v2465_v46 = vld [vmem:[%s3033_s2 + $0x270] sm:$0xff]  }
  0x23   : > { %2202 = vmatprep.subr.bf16.mxu1 %v2396_v29  ;;  %v2447_v28 = vld [vmem:[%s3033_s2 + $0x208] sm:$0xff]   ;;  %v2460_v41 = vld [vmem:[%s3033_s2 + $0x2a0] sm:$0xff]   ;;  %v2466_v47 = vld [vmem:[%s3033_s2 + $0x2f0] sm:$0xff]  }
  0x24   : > { %v2448_v29 = vld [vmem:[%s3033_s2 + $0x288] sm:$0xff]   ;;  %v2467_v48 = vld [vmem:[%s3033_s2 + $0x230] sm:$0xff]   ;;  %v2469_v50 = vld [vmem:[%s3033_s2 + $0x278] sm:$0xff]  }
  0x25   : > { %2181 = vmatpush3.bf16.msra.mxu0 %v2397_v30  ;;  %v2449_v30 = vld [vmem:[%s3033_s2 + $0x250] sm:$0xff]   ;;  %v2471_v52 = vld [vmem:[%s3033_s2 + $0x238] sm:$0xff]  }
  0x26   : > { %2203 = vmatpush3.bf16.msra.mxu1 %v2398_v31  ;;  %2210 = vmatprep.subr.bf16.mxu0 %v2409_v44  ;;  %v2450_v31 = vld [vmem:[%s3033_s2 + $0x2d0] sm:$0xff]   ;;  %v2463_v44 = vld [vmem:[%s3033_s2 + $0x228] sm:$0xff]  }
  0x27   : > { %2232 = vmatprep.subr.bf16.mxu1 %v2410_v53  ;;  %v2468_v49 = vld [vmem:[%s3033_s2 + $0x2b0] sm:$0xff]   ;;  %v2472_v53 = vld [vmem:[%s3033_s2 + $0x2b8] sm:$0xff]  }
  0x28   : > { %638 = vmatmul.mubr.bf16.vlgmr.msra.gmra.mrb[0].mxu0 %v399_v51  ;;  %v2470_v51 = vld [vmem:[%s3033_s2 + $0x2f8] sm:$0xff]   ;;  %v2897_v54 = vld [vmem:[%s2888_s5] ss:$16 sps:$4 sm:$0xff]  }
  0x29   : > { %679 = vmatmul.mubr.bf16.vlgmr.msra.gmra.mrb[0].mxu1 %v405_v56  ;;  %2211 = vmatpush3.bf16.msra.mxu0 %v2411_v55  ;;  %v2900_v55 = vld [vmem:[%s2888_s5 + $0x4] ss:$16 sps:$4 sm:$0xff]   ;;  %v2903_v56 = vld [vmem:[%s2888_s5 + $0x8] ss:$16 sps:$4 sm:$0xff]  }
  0x2a   : > { %2233 = vmatpush3.bf16.msra.mxu1 %v2412_v57  ;;  %915 = vmatprep.mubr.bf16.mxu0 %v2399_v33  ;;  %v2452_v33 = vld [vmem:[%s3033_s2 + $0x290] sm:$0xff]   ;;  %v2906_v57 = vld [vmem:[%s2888_s5 + $0xc] ss:$16 sps:$4 sm:$0xff]  }
  0x2b   : > { %2212 = vmatprep.subr.bf16.mxu0 %v2413_v58  ;;  %956 = vmatprep.mubr.bf16.mxu1 %v2402_v37  ;;  %v2456_v37 = vld [vmem:[%s3033_s2 + $0x298] sm:$0xff]   ;;  %v2479_v58 = vld [vmem:[%s3033_s2 + $0x340] sm:$0xff]  }
  0x2c   : > { %2234 = vmatprep.subr.bf16.mxu1 %v2414_v59  ;;  %v2480_v59 = vld [vmem:[%s3033_s2 + $0x3c0] sm:$0xff]  }
  0x2d   : > { %2213 = vmatpush3.bf16.msra.mxu0 %v2415_v60  ;;  %v2481_v60 = vld [vmem:[%s3033_s2 + $0x300] sm:$0xff]  }
  0x2e   : > { %2235 = vmatpush3.bf16.msra.mxu1 %v2416_v61  ;;  %2214 = vmatprep.subr.bf16.mxu0 %v2417_v62  ;;  %v2482_v61 = vld [vmem:[%s3033_s2 + $0x380] sm:$0xff]   ;;  %v2483_v62 = vld [vmem:[%s3033_s2 + $0x348] sm:$0xff]  }
  0x2f   : > { %2236 = vmatprep.subr.bf16.mxu1 %v2418_v63  ;;  %v2484_v63 = vld [vmem:[%s3033_s2 + $0x3c8] sm:$0xff]  }
  0x31   : > { %2215 = vmatpush3.bf16.msra.mxu0 %v2419_v0  ;;  %v2485_v0 = vld [vmem:[%s3033_s2 + $0x308] sm:$0xff]  }
  0x32   : > { %2237 = vmatpush3.bf16.msra.mxu1 %v2420_v1  ;;  %2216 = vmatprep.subr.bf16.mxu0 %v2421_v2  ;;  %v2486_v1 = vld [vmem:[%s3033_s2 + $0x388] sm:$0xff]   ;;  %v2487_v2 = vld [vmem:[%s3033_s2 + $0x350] sm:$0xff]  }
  0x33   : > { %2238 = vmatprep.subr.bf16.mxu1 %v2422_v3  ;;  %v2488_v3 = vld [vmem:[%s3033_s2 + $0x3d0] sm:$0xff]  }
  0x35   : > { %2217 = vmatpush3.bf16.msra.mxu0 %v2423_v4  ;;  %v2489_v4 = vld [vmem:[%s3033_s2 + $0x310] sm:$0xff]  }
  0x36   : > { %2239 = vmatpush3.bf16.msra.mxu1 %v2424_v5  ;;  %2218 = vmatprep.subr.bf16.mxu0 %v2425_v6  ;;  %v2490_v5 = vld [vmem:[%s3033_s2 + $0x390] sm:$0xff]   ;;  %v2491_v6 = vld [vmem:[%s3033_s2 + $0x358] sm:$0xff]  }
  0x37   : > { %2240 = vmatprep.subr.bf16.mxu1 %v2426_v7  ;;  %v2492_v7 = vld [vmem:[%s3033_s2 + $0x3d8] sm:$0xff]  }
  0x39   : > { %2219 = vmatpush3.bf16.msra.mxu0 %v2427_v8  ;;  %v2493_v8 = vld [vmem:[%s3033_s2 + $0x318] sm:$0xff]  }
  0x3a   : > { %2241 = vmatpush3.bf16.msra.mxu1 %v2428_v9  ;;  %2220 = vmatprep.subr.bf16.mxu0 %v2429_v10  ;;  %v2494_v9 = vld [vmem:[%s3033_s2 + $0x398] sm:$0xff]   ;;  %v2495_v10 = vld [vmem:[%s3033_s2 + $0x360] sm:$0xff]  }
  0x3b   : > { %2242 = vmatprep.subr.bf16.mxu1 %v2430_v11  ;;  %v2496_v11 = vld [vmem:[%s3033_s2 + $0x3e0] sm:$0xff]  }
  0x3d   : > { %2221 = vmatpush3.bf16.msra.mxu0 %v2431_v12  ;;  %v2497_v12 = vld [vmem:[%s3033_s2 + $0x320] sm:$0xff]  }
  0x3e   : > { %2243 = vmatpush3.bf16.msra.mxu1 %v2432_v13  ;;  %2222 = vmatprep.subr.bf16.mxu0 %v2433_v14  ;;  %v2498_v13 = vld [vmem:[%s3033_s2 + $0x3a0] sm:$0xff]   ;;  %v2499_v14 = vld [vmem:[%s3033_s2 + $0x368] sm:$0xff]  }
  0x3f   : > { %2244 = vmatprep.subr.bf16.mxu1 %v2434_v15  ;;  %v2500_v15 = vld [vmem:[%s3033_s2 + $0x3e8] sm:$0xff]  }
  0x41   : > { %2223 = vmatpush3.bf16.msra.mxu0 %v2435_v16  ;;  %v2501_v16 = vld [vmem:[%s3033_s2 + $0x328] sm:$0xff]  }
  0x42   : > { %2245 = vmatpush3.bf16.msra.mxu1 %v2436_v17  ;;  %2224 = vmatprep.subr.bf16.mxu0 %v2437_v18  ;;  %v2502_v17 = vld [vmem:[%s3033_s2 + $0x3a8] sm:$0xff]   ;;  %v2503_v18 = vld [vmem:[%s3033_s2 + $0x370] sm:$0xff]  }
  0x43   : > { %2246 = vmatprep.subr.bf16.mxu1 %v2438_v19  ;;  %v2504_v19 = vld [vmem:[%s3033_s2 + $0x3f0] sm:$0xff]  }
  0x45   : > { %2225 = vmatpush3.bf16.msra.mxu0 %v2439_v20  ;;  %v2505_v20 = vld [vmem:[%s3033_s2 + $0x330] sm:$0xff]  }
  0x46   : > { %2247 = vmatpush3.bf16.msra.mxu1 %v2440_v21  ;;  %2254 = vmatprep.subr.bf16.mxu0 %v2441_v22  ;;  %v2506_v21 = vld [vmem:[%s3033_s2 + $0x3b0] sm:$0xff]   ;;  %v2507_v22 = vld [vmem:[%s3033_s2 + $0x378] sm:$0xff]  }
  0x47   : > { %2276 = vmatprep.subr.bf16.mxu1 %v2442_v23  ;;  %v2508_v23 = vld [vmem:[%s3033_s2 + $0x3f8] sm:$0xff]  }
  0x48   : > { %916 = vmatmul.mubr.bf16.vlgmr.msra.gmra.mrb[4].mxu0 %v2685_v38  ;;  %v2457_v38 = vld [vmem:[%s3033_s2 + $0x260] sm:$0xff]  }
  0x49   : > { %957 = vmatmul.mubr.bf16.vlgmr.msra.gmra.mrb[4].mxu1 %v2687_v43  ;;  %2255 = vmatpush3.bf16.msra.mxu0 %v2443_v24  ;;  %v2462_v43 = vld [vmem:[%s3033_s2 + $0x2e8] sm:$0xff]   ;;  %v1404_v24 = vrot.slane %v2900_v55, 2 }
  0x4a   : > { %2277 = vmatpush3.bf16.msra.mxu1 %v2444_v25  ;;  %2256 = vmatprep.subr.bf16.mxu0 %v2445_v26  ;;  %v2509_v25 = vld [vmem:[%s3033_s2 + $0x338] sm:$0xff]   ;;  %v1410_v26 = vrot.slane %v2906_v57, 2 }
  0x4b   : > { %2278 = vmatprep.subr.bf16.mxu1 %v2446_v27  ;;  %1274 = vmatprep.mubr.bf16.mxu0 %v2900_v55  ;;  %v2510_v27 = vld [vmem:[%s3033_s2 + $0x3b8] sm:$0xff]  }
  0x4c   : > { %1315 = vmatprep.mubr.bf16.mxu1 %v2906_v57 }
  0x4d   : > { %2257 = vmatpush3.bf16.msra.mxu0 %v2447_v28  ;;  %v239_v28 = vld [vmem:[%s2888_s5 + $0x20] sm:$0x33] }
  0x4e   : > { %2279 = vmatpush3.bf16.msra.mxu1 %v2448_v29  ;;  %2258 = vmatprep.subr.bf16.mxu0 %v2449_v30  ;;  %v240_v29 = vld [vmem:[%s2888_s5 + $0x28] sm:$0x33]  ;;  %v1401_v30 = vrot.slane %v2897_v54, 2  ;;  %s2158_s5 = sshll.u32 %s3040_s12, 3 }
  0x4f   : > { %2280 = vmatprep.subr.bf16.mxu1 %v2450_v31  ;;  %v1407_v31 = vrot.slane %v2903_v56, 2  ;;  %s227_s22 = scalar_lea.vmem %s3034_s3, %s2158_s5 }
  0x51   : > { %2259 = vmatpush3.bf16.msra.mxu0 %v2451_v32  ;;  %v2119_v32 = vcombine.high %v239_v28, %v239_v28 }
  0x52   : > { %2281 = vmatpush3.bf16.msra.mxu1 %v2452_v33  ;;  %2260 = vmatprep.subr.bf16.mxu0 %v2453_v34  ;;  %v2121_v33 = vcombine.high %v240_v29, %v240_v29  ;;  %v2118_v34 = vcombine.low %v239_v28, %v239_v28 }
  0x53   : > { %2282 = vmatprep.subr.bf16.mxu1 %v2454_v35  ;;  %v2120_v35 = vcombine.low %v240_v29, %v240_v29 }
  0x55   : > { %2261 = vmatpush3.bf16.msra.mxu0 %v2455_v36  ;;  %v1405_v36 = vrot.slane %v2119_v32, 2 }
  0x56   : > { %2283 = vmatpush3.bf16.msra.mxu1 %v2456_v37  ;;  %2262 = vmatprep.subr.bf16.mxu0 %v2457_v38  ;;  %v1411_v37 = vrot.slane %v2121_v33, 2  ;;  %v1402_v38 = vrot.slane %v2118_v34, 2 }
  0x57   : > { %2284 = vmatprep.subr.bf16.mxu1 %v2458_v39  ;;  %v1408_v39 = vrot.slane %v2120_v35, 2 }
  0x59   : > { %2263 = vmatpush3.bf16.msra.mxu0 %v2459_v40  ;;  %v1406_v40 = vsel %vm396_vm0, %v1404_v24, %v1405_v36 }
  0x5a   : > { %2285 = vmatpush3.bf16.msra.mxu1 %v2460_v41  ;;  %2264 = vmatprep.subr.bf16.mxu0 %v2461_v42  ;;  %v1412_v41 = vsel %vm396_vm0, %v1410_v26, %v1411_v37  ;;  %v1403_v42 = vsel %vm396_vm0, %v1401_v30, %v1402_v38 }
  0x5b   : > { %2286 = vmatprep.subr.bf16.mxu1 %v2462_v43  ;;  %v1409_v43 = vsel %vm396_vm0, %v1407_v31, %v1408_v39 }
  0x5d   : > { %2265 = vmatpush3.bf16.msra.mxu0 %v2463_v44 }
  0x5e   : > { %2287 = vmatpush3.bf16.msra.mxu1 %v2464_v45  ;;  %2266 = vmatprep.subr.bf16.mxu0 %v2465_v46 }
  0x5f   : > { %2288 = vmatprep.subr.bf16.mxu1 %v2466_v47 }
  0x61   : > { %2267 = vmatpush3.bf16.msra.mxu0 %v2467_v48 }
  0x62   : > { %2289 = vmatpush3.bf16.msra.mxu1 %v2468_v49  ;;  %2268 = vmatprep.subr.bf16.mxu0 %v2469_v50 }
  0x63   : > { %2290 = vmatprep.subr.bf16.mxu1 %v2470_v51 }
  0x65   : > { %2269 = vmatpush3.bf16.msra.mxu0 %v2471_v52 }
  0x66   : > { %2291 = vmatpush3.bf16.msra.mxu1 %v2472_v53  ;;  %2298 = vmatprep.subr.bf16.mxu0 %v2479_v58 }
  0x67   : > { %2320 = vmatprep.subr.bf16.mxu1 %v2480_v59 }
  0x68   : > { %1275 = vmatmul.mubr.bf16.vlgmr.msra.gmra.mrb[8].mxu0 %v2897_v54 }
  0x69   : > { %1316 = vmatmul.mubr.bf16.vlgmr.msra.gmra.mrb[8].mxu1 %v2903_v56  ;;  %2299 = vmatpush3.bf16.msra.mxu0 %v2481_v60 }
  0x6a   : > { %2321 = vmatpush3.bf16.msra.mxu1 %v2482_v61  ;;  %2300 = vmatprep.subr.bf16.mxu0 %v2483_v62 }
  0x6b   : > { %2322 = vmatprep.subr.bf16.mxu1 %v2484_v63  ;;  %1641 = vmatprep.mubr.bf16.mxu0 %v1406_v40 }
  0x6c   : > { %1682 = vmatprep.mubr.bf16.mxu1 %v1412_v41 }
  0x6d   : > { %2301 = vmatpush3.bf16.msra.mxu0 %v2485_v0 }
  0x6e   : > { %2323 = vmatpush3.bf16.msra.mxu1 %v2486_v1  ;;  %2302 = vmatprep.subr.bf16.mxu0 %v2487_v2 }
  0x6f   : > { %2324 = vmatprep.subr.bf16.mxu1 %v2488_v3 }
  0x71   : > { %2303 = vmatpush3.bf16.msra.mxu0 %v2489_v4 }
  0x72   : > { %2325 = vmatpush3.bf16.msra.mxu1 %v2490_v5  ;;  %2304 = vmatprep.subr.bf16.mxu0 %v2491_v6 }
  0x73   : > { %2326 = vmatprep.subr.bf16.mxu1 %v2492_v7 }
  0x75   : > { %2305 = vmatpush3.bf16.msra.mxu0 %v2493_v8 }
  0x76   : > { %2327 = vmatpush3.bf16.msra.mxu1 %v2494_v9  ;;  %2306 = vmatprep.subr.bf16.mxu0 %v2495_v10 }
  0x77   : > { %2328 = vmatprep.subr.bf16.mxu1 %v2496_v11 }
  0x79   : > { %2307 = vmatpush3.bf16.msra.mxu0 %v2497_v12 }
  0x7a   : > { %2329 = vmatpush3.bf16.msra.mxu1 %v2498_v13  ;;  %2308 = vmatprep.subr.bf16.mxu0 %v2499_v14 }
  0x7b   : > { %2330 = vmatprep.subr.bf16.mxu1 %v2500_v15 }
  0x7d   : > { %2309 = vmatpush3.bf16.msra.mxu0 %v2501_v16 }
  0x7e   : > { %2331 = vmatpush3.bf16.msra.mxu1 %v2502_v17  ;;  %2310 = vmatprep.subr.bf16.mxu0 %v2503_v18 }
  0x7f   : > { %2332 = vmatprep.subr.bf16.mxu1 %v2504_v19 }
  0x81   : > { %2311 = vmatpush3.bf16.msra.mxu0 %v2505_v20 }
  0x82   : > { %2333 = vmatpush3.bf16.msra.mxu1 %v2506_v21  ;;  %2312 = vmatprep.subr.bf16.mxu0 %v2507_v22 }
  0x83   : > { %2334 = vmatprep.subr.bf16.mxu1 %v2508_v23 }
  0x85   : > { %2313 = vmatpush3.bf16.msra.mxu0 %v2509_v25 }
  0x86   : > { %2335 = vmatpush3.bf16.msra.mxu1 %v2510_v27 }
  0x88   : > { %1642 = vmatmul.mubr.bf16.vlgmr.msra.gmra.mrb[12].mxu0 %v1403_v42 }
  0x89   : > { %1683 = vmatmul.mubr.bf16.vlgmr.msra.gmra.mrb[12].mxu1 %v1409_v43 }
  0xfb   : > { %v2182_v44 = vpop.f32.mrb[0].mxu0 }
  0xfc   : > { %v2183_v45 = vpop.f32.mrb[1].mxu0  ;;  %v2204_v46 = vpop.f32.mrb[0].mxu1 }
  0xfd   : > { %v2184_v47 = vadd.f32 %v2183_v45, %v2182_v44  ;;  %v2185_v48 = vpop.f32.mrb[2].mxu0  ;;  %v2205_v49 = vpop.f32.mrb[1].mxu1 }
  0xfe   : > { %v2186_v50 = vpop.f32.mrb[3].mxu0  ;;  %v2206_v51 = vadd.f32 %v2205_v49, %v2204_v46  ;;  %v2207_v52 = vpop.f32.mrb[2].mxu1 }
  0xff   : > { %v2187_v53 = vadd.f32 %v2186_v50, %v2185_v48  ;;  %v2208_v54 = vpop.f32.mrb[3].mxu1 }
 0x100   : > { %v681_v55 = vadd.f32 %v2206_v51, %v2184_v47  ;;  %v2209_v56 = vadd.f32 %v2208_v54, %v2207_v52 }
 0x102   : > { %v684_v57 = vadd.f32 %v2209_v56, %v2187_v53 }
 0x11b   : > { %v2226_v58 = vpop.f32.mrb[4].mxu0 }
 0x11c   : > { %v2248_v59 = vpop.f32.mrb[4].mxu1  ;;  %v2227_v60 = vpop.f32.mrb[5].mxu0 }
 0x11d   : > { %v2228_v61 = vadd.f32 %v2227_v60, %v2226_v58  ;;  %v2249_v62 = vpop.f32.mrb[5].mxu1  ;;  %v2229_v63 = vpop.f32.mrb[6].mxu0 }
 0x11e   : > { %v2250_v0 = vadd.f32 %v2249_v62, %v2248_v59  ;;  %v2251_v1 = vpop.f32.mrb[6].mxu1  ;;  %v2230_v2 = vpop.f32.mrb[7].mxu0 }
 0x11f   : > { %v918_v3 = vadd.f32 %v2228_v61, %v681_v55  ;;  %v2231_v4 = vadd.f32 %v2230_v2, %v2229_v63  ;;  %v2252_v5 = vpop.f32.mrb[7].mxu1 }
 0x120   : > { %v2253_v6 = vadd.f32 %v2252_v5, %v2251_v1 }
 0x121   : > { %v959_v7 = vadd.f32 %v2250_v0, %v918_v3  ;;  %v921_v8 = vadd.f32 %v2231_v4, %v684_v57 }
 0x123   : > { %v962_v9 = vadd.f32 %v2253_v6, %v921_v8 }
 0x13b   : > { %v2270_v10 = vpop.f32.mrb[8].mxu0 }
 0x13c   : > { %v2292_v11 = vpop.f32.mrb[8].mxu1  ;;  %v2271_v12 = vpop.f32.mrb[9].mxu0 }
 0x13d   : > { %v2272_v13 = vadd.f32 %v2271_v12, %v2270_v10  ;;  %v2293_v14 = vpop.f32.mrb[9].mxu1  ;;  %v2273_v15 = vpop.f32.mrb[10].mxu0 }
 0x13e   : > { %v2294_v16 = vadd.f32 %v2293_v14, %v2292_v11  ;;  %v2295_v17 = vpop.f32.mrb[10].mxu1  ;;  %v2274_v18 = vpop.f32.mrb[11].mxu0 }
 0x13f   : > { %v2275_v19 = vadd.f32 %v2274_v18, %v2273_v15  ;;  %v2296_v20 = vpop.f32.mrb[11].mxu1 }
 0x140   : > { %v1318_v21 = vadd.f32 %v2294_v16, %v2272_v13  ;;  %v2297_v22 = vadd.f32 %v2296_v20, %v2295_v17 }
 0x142   : > { %v1324_v23 = vadd.f32 %v1318_v21, %v959_v7  ;;  %v1321_v24 = vadd.f32 %v2297_v22, %v2275_v19 }
 0x144   : > { %v1325_v25 = vadd.f32 %v1321_v24, %v962_v9 }
 0x15b   : > { %v2314_v26 = vpop.f32.mrb[12].mxu0 }
 0x15c   : > { %v2336_v27 = vpop.f32.mrb[12].mxu1  ;;  %v2315_v28 = vpop.f32.mrb[13].mxu0 }
 0x15d   : > { %v2337_v29 = vpop.f32.mrb[13].mxu1  ;;  %v2316_v30 = vadd.f32 %v2315_v28, %v2314_v26  ;;  %v2317_v32 = vpop.f32.mrb[14].mxu0 }
 0x15e   : > { %v2338_v31 = vadd.f32 %v2337_v29, %v2336_v27  ;;  %v2339_v33 = vpop.f32.mrb[14].mxu1  ;;  %v2318_v34 = vpop.f32.mrb[15].mxu0 }
 0x15f   : > { %v2340_v35 = vpop.f32.mrb[15].mxu1  ;;  %v2319_v37 = vadd.f32 %v2318_v34, %v2317_v32 }
 0x160   : > { %v1685_v36 = vadd.f32 %v2338_v31, %v2316_v30  ;;  %v2341_v38 = vadd.f32 %v2340_v35, %v2339_v33 }
 0x162   : > { %v1691_v39 = vadd.f32 %v1685_v36, %v1324_v23  ;;  %v1688_v40 = vadd.f32 %v2341_v38, %v2319_v37 }
 0x164   : > { %v1692_v41 = vadd.f32 %v1688_v40, %v1325_v25 }
 0x166   : > { %v2164_v42 = vpack.c.bf16 %v1692_v41, %v1691_v39 }
 0x168   : > { %2165 = vst [vmem:[%s227_s22] sm:$0xff] %v2164_v42  }
 0x169 PF: > { %s13_s14 = sadd.s32 1, %s2537_s14   ;;  %s3035_s12 = smov %s2533_s13 }
 0x16a   : > { %p10_p5 = scmp.ge.s32.totalorder %s13_s14, 4   ;;  %s3036_s13 = smov %s3038_s15 }
 0x16c   :  { %12 = sbr.rel (!%p10_p5) target bundleno = 2 (0x2), region = 71 }

// kernel: critic_forward.7
= control target key start
LH: loop header
LB: loop body
LE: loop exit
PB: predicated region body
PF: predicated region fallthrough
CT: control target
= control target key end

     0   :  { %s2094_s15 = smov 0   ;;  %s2096_s16 = smov 0   ;;  %s2977_s0 = inlined_call_operand.vmem [shape: f32[2,2,512], index: 0, kind: input, shape index: {}]   ;;  %s2978_s1 = inlined_call_operand.vmem [shape: f32[2,2,512], index: 1, kind: input, shape index: {}]   ;;  %s2979_s2 = inlined_call_operand.vmem [shape: f32[4,512,128], index: 2, kind: input, shape index: {}]   ;;  %s2980_s3 = inlined_call_operand.vmem [shape: f32[1,128], index: 3, kind: input, shape index: {}]   ;;  %s2981_s4 = inlined_call_operand.vmem [shape: f32[2,1,128], index: 4, kind: output, shape index: {}]  }
   0x1   :  { %s2098_s17 = smov 0  }
   0x2 LB: > { %s26_s18 = sadd.s32 1, %s2063_s16  ;;  %p1284_p0 = scmp.ge.s32.totalorder %s2067_s17, 1  ;;  %s2067_s17 = sphi %s2098_s17, %s14_s17   ;;  %s2063_s16 = sphi %s2096_s16, %s2983_s16   ;;  %s2059_s15 = sphi %s2094_s15, %s2982_s15  }
   0x3   : > { %p28_p1 = scmp.ge.s32.totalorder %s26_s18, 2  ;;  %p203_p2 = scmp.lt.s32.totalorder %s2067_s17, 3 }
   0x5   : > { %s2985_s18 = smov (%p28_p1, %s26_s18), 0  ;;  %p204_p3 = pnand %p1284_p0, %p203_p2 }
   0x6   : > { %v1305_v0 = vld [vmem:[%s2979_s2 + $0x280] sm:$0xff] (!%p204_p3)  ;;  %v1306_v1 = vld [vmem:[%s2979_s2 + $0x288] sm:$0xff] (!%p204_p3)  ;;  %v1307_v11 = vld [vmem:[%s2979_s2 + $0x290] sm:$0xff] (!%p204_p3)  ;;  %p242_p4 = scmp.lt.s32.totalorder (!%p204_p3), %s2059_s15, 1  ;;  %v397_v47 = vlaneseq (!%p204_p3) }
   0x7   : > { %207 = sbr.rel (%p204_p3) target bundleno = 361 (0x169), region = 36  ;;  %v1337_v2 = vld [vmem:[%s2979_s2 + $0x380] sm:$0xff] (!%p204_p3)  ;;  %v1765_v3 = vpack.c.bf16 (!%p204_p3), %v1306_v1, %v1305_v0  ;;  %v1338_v4 = vld [vmem:[%s2979_s2 + $0x388] sm:$0xff] (!%p204_p3)  ;;  %v1308_v13 = vld [vmem:[%s2979_s2 + $0x298] sm:$0xff] (!%p204_p3) }
   0x8   : > { %v1289_v5 = vld [vmem:[%s2979_s2 + $0x200] sm:$0xff] (!%p204_p3)  ;;  %v1290_v6 = vld [vmem:[%s2979_s2 + $0x208] sm:$0xff] (!%p204_p3)  ;;  %v1797_v7 = vpack.c.bf16 (!%p204_p3), %v1338_v4, %v1337_v2  ;;  %v1339_v14 = vld [vmem:[%s2979_s2 + $0x390] sm:$0xff] (!%p204_p3)  ;;  %v1769_v16 = vpack.c.bf16 (!%p204_p3), %v1308_v13, %v1307_v11  ;;  %v2246_v61 = vshrl.u32 (!%p204_p3), %v397_v47, 7 }
   0x9   : > { %v1767_v8 = vpack.c.bf16 (!%p204_p3), %v1290_v6, %v1289_v5  ;;  %v1321_v9 = vld [vmem:[%s2979_s2 + $0x300] sm:$0xff] (!%p204_p3)  ;;  %v1322_v10 = vld [vmem:[%s2979_s2 + $0x308] sm:$0xff] (!%p204_p3)  ;;  %1766 = vmatprep.subr.bf16.mxu0 (!%p204_p3), %v1765_v3  ;;  %v1340_v15 = vld [vmem:[%s2979_s2 + $0x398] sm:$0xff] (!%p204_p3) }
   0xa   : > { %v1799_v12 = vpack.c.bf16 (!%p204_p3), %v1322_v10, %v1321_v9  ;;  %1798 = vmatprep.subr.bf16.mxu1 (!%p204_p3), %v1797_v7  ;;  %v1801_v17 = vpack.c.bf16 (!%p204_p3), %v1340_v15, %v1339_v14  ;;  %v1291_v18 = vld [vmem:[%s2979_s2 + $0x210] sm:$0xff] (!%p204_p3)  ;;  %v1292_v19 = vld [vmem:[%s2979_s2 + $0x218] sm:$0xff] (!%p204_p3)  ;;  %v1309_v23 = vld [vmem:[%s2979_s2 + $0x2a0] sm:$0xff] (!%p204_p3)  ;;  %v403_v10 = vsub.s32 (!%p204_p3), 3, %v2246_v61  ;;  %v411_v11 = vsub.s32 (!%p204_p3), 7, %v2246_v61 }
   0xb   : > { %1768 = vmatpush3.bf16.msra.mxu0 (!%p204_p3), %v1767_v8  ;;  %v1323_v20 = vld [vmem:[%s2979_s2 + $0x310] sm:$0xff] (!%p204_p3)  ;;  %v1771_v21 = vpack.c.bf16 (!%p204_p3), %v1292_v19, %v1291_v18  ;;  %v1324_v22 = vld [vmem:[%s2979_s2 + $0x318] sm:$0xff] (!%p204_p3)  ;;  %v1310_v24 = vld [vmem:[%s2979_s2 + $0x2a8] sm:$0xff] (!%p204_p3) }
   0xc   : > { %1800 = vmatpush3.bf16.msra.mxu1 (!%p204_p3), %v1799_v12  ;;  %1770 = vmatprep.subr.bf16.mxu0 (!%p204_p3), %v1769_v16  ;;  %v1803_v25 = vpack.c.bf16 (!%p204_p3), %v1324_v22, %v1323_v20  ;;  %v1773_v26 = vpack.c.bf16 (!%p204_p3), %v1310_v24, %v1309_v23  ;;  %v1341_v27 = vld [vmem:[%s2979_s2 + $0x3a0] sm:$0xff] (!%p204_p3)  ;;  %v1342_v28 = vld [vmem:[%s2979_s2 + $0x3a8] sm:$0xff] (!%p204_p3)  ;;  %v1311_v35 = vld [vmem:[%s2979_s2 + $0x2b0] sm:$0xff] (!%p204_p3) }
   0xd   : > { %1802 = vmatprep.subr.bf16.mxu1 (!%p204_p3), %v1801_v17  ;;  %v1293_v29 = vld [vmem:[%s2979_s2 + $0x220] sm:$0xff] (!%p204_p3)  ;;  %v1805_v30 = vpack.c.bf16 (!%p204_p3), %v1342_v28, %v1341_v27  ;;  %v1294_v31 = vld [vmem:[%s2979_s2 + $0x228] sm:$0xff] (!%p204_p3)  ;;  %v1312_v36 = vld [vmem:[%s2979_s2 + $0x2b8] sm:$0xff] (!%p204_p3) }
   0xe   : > { %v1325_v32 = vld [vmem:[%s2979_s2 + $0x320] sm:$0xff]  ;;  %v1326_v33 = vld [vmem:[%s2979_s2 + $0x328] sm:$0xff]  ;;  %v1775_v34 = vpack.c.bf16 %v1294_v31, %v1293_v29  ;;  %v1343_v37 = vld [vmem:[%s2979_s2 + $0x3b0] sm:$0xff]  ;;  %v1777_v39 = vpack.c.bf16 %v1312_v36, %v1311_v35  ;;  %s2987_s15 = smov (!%p242_p4, %s2059_s15), 1 }
   0xf   : > { %1772 = vmatpush3.bf16.msra.mxu0 %v1771_v21  ;;  %v1807_v38 = vpack.c.bf16 %v1326_v33, %v1325_v32  ;;  %v1344_v40 = vld [vmem:[%s2979_s2 + $0x3b8] sm:$0xff]  ;;  %v1295_v41 = vld [vmem:[%s2979_s2 + $0x230] sm:$0xff]  ;;  %v1313_v46 = vld [vmem:[%s2979_s2 + $0x2c0] sm:$0xff]  ;;  %s1483_s19 = sshll.u32 %s2987_s15, 3  ;;  %s264_s22 = scalar_lea.vmem %s2981_s4, %s2987_s15 }
  0x10   : > { %1804 = vmatpush3.bf16.msra.mxu1 %v1803_v25  ;;  %1774 = vmatprep.subr.bf16.mxu0 %v1773_v26  ;;  %v1296_v42 = vld [vmem:[%s2979_s2 + $0x238] sm:$0xff]  ;;  %v1809_v43 = vpack.c.bf16 %v1344_v40, %v1343_v37  ;;  %v1327_v44 = vld [vmem:[%s2979_s2 + $0x330] sm:$0xff]  ;;  %v1314_v48 = vld [vmem:[%s2979_s2 + $0x2c8] sm:$0xff]  ;;  %s246_s8 = scalar_lea.vmem %s2977_s0, %s1483_s19  ;;  %s251_s7 = scalar_lea.vmem %s2978_s1, %s1483_s19 }
  0x11   : > { %1806 = vmatprep.subr.bf16.mxu1 %v1805_v30  ;;  %v1328_v45 = vld [vmem:[%s2979_s2 + $0x338] sm:$0xff]  ;;  %v1345_v49 = vld [vmem:[%s2979_s2 + $0x3c0] sm:$0xff]  ;;  %v1346_v50 = vld [vmem:[%s2979_s2 + $0x3c8] sm:$0xff]  ;;  %v1779_v51 = vpack.c.bf16 %v1296_v42, %v1295_v41  ;;  %v1781_v53 = vpack.c.bf16 %v1314_v48, %v1313_v46 }
  0x12   : > { %v1811_v52 = vpack.c.bf16 %v1328_v45, %v1327_v44  ;;  %v1297_v54 = vld [vmem:[%s2979_s2 + $0x240] sm:$0xff]  ;;  %v1298_v55 = vld [vmem:[%s2979_s2 + $0x248] sm:$0xff]  ;;  %v1813_v57 = vpack.c.bf16 %v1346_v50, %v1345_v49  ;;  %v1315_v59 = vld [vmem:[%s2979_s2 + $0x2d0] sm:$0xff] }
  0x13   : > { %1776 = vmatpush3.bf16.msra.mxu0 %v1775_v34  ;;  %v1329_v56 = vld [vmem:[%s2979_s2 + $0x340] sm:$0xff]  ;;  %v1330_v58 = vld [vmem:[%s2979_s2 + $0x348] sm:$0xff]  ;;  %v1316_v60 = vld [vmem:[%s2979_s2 + $0x2d8] sm:$0xff]  ;;  %v1783_v0 = vpack.c.bf16 %v1298_v55, %v1297_v54 }
  0x14   : > { %1808 = vmatpush3.bf16.msra.mxu1 %v1807_v38  ;;  %1778 = vmatprep.subr.bf16.mxu0 %v1777_v39  ;;  %v1347_v62 = vld [vmem:[%s2979_s2 + $0x3d0] sm:$0xff]  ;;  %v1348_v63 = vld [vmem:[%s2979_s2 + $0x3d8] sm:$0xff]  ;;  %v1815_v1 = vpack.c.bf16 %v1330_v58, %v1329_v56  ;;  %v1785_v2 = vpack.c.bf16 %v1316_v60, %v1315_v59  ;;  %v1317_v8 = vld [vmem:[%s2979_s2 + $0x2e0] sm:$0xff]  ;;  %v399_v39 = vsub.s32 1, %v2246_v61 }
  0x15   : > { %1810 = vmatprep.subr.bf16.mxu1 %v1809_v43  ;;  %v1299_v3 = vld [vmem:[%s2979_s2 + $0x250] sm:$0xff]  ;;  %v1300_v4 = vld [vmem:[%s2979_s2 + $0x258] sm:$0xff]  ;;  %v1817_v6 = vpack.c.bf16 %v1348_v63, %v1347_v62  ;;  %v1318_v9 = vld [vmem:[%s2979_s2 + $0x2e8] sm:$0xff]  ;;  %v407_v43 = vsub.s32 5, %v2246_v61 }
  0x16   : > { %v1331_v5 = vld [vmem:[%s2979_s2 + $0x350] sm:$0xff]  ;;  %v1332_v7 = vld [vmem:[%s2979_s2 + $0x358] sm:$0xff]  ;;  %v1349_v12 = vld [vmem:[%s2979_s2 + $0x3e0] sm:$0xff]  ;;  %v1787_v14 = vpack.c.bf16 %v1300_v4, %v1299_v3  ;;  %v1789_v17 = vpack.c.bf16 %v1318_v9, %v1317_v8 }
  0x17   : > { %1780 = vmatpush3.bf16.msra.mxu0 %v1779_v51  ;;  %v1350_v13 = vld [vmem:[%s2979_s2 + $0x3e8] sm:$0xff]  ;;  %v1301_v15 = vld [vmem:[%s2979_s2 + $0x260] sm:$0xff]  ;;  %v1819_v16 = vpack.c.bf16 %v1332_v7, %v1331_v5  ;;  %v1319_v23 = vld [vmem:[%s2979_s2 + $0x2f0] sm:$0xff] }
  0x18   : > { %1812 = vmatpush3.bf16.msra.mxu1 %v1811_v52  ;;  %1782 = vmatprep.subr.bf16.mxu0 %v1781_v53  ;;  %v1302_v18 = vld [vmem:[%s2979_s2 + $0x268] sm:$0xff]  ;;  %v1333_v19 = vld [vmem:[%s2979_s2 + $0x360] sm:$0xff]  ;;  %v1821_v21 = vpack.c.bf16 %v1350_v13, %v1349_v12  ;;  %v1320_v24 = vld [vmem:[%s2979_s2 + $0x2f8] sm:$0xff]  ;;  %v563_v53 = vsub.s32 2, %v2246_v61 }
  0x19   : > { %1814 = vmatprep.subr.bf16.mxu1 %v1813_v57  ;;  %v2295_v20 = vld [vmem:[%s246_s8] sm:$0xff]  ;;  %v1334_v22 = vld [vmem:[%s2979_s2 + $0x368] sm:$0xff]  ;;  %v1351_v27 = vld [vmem:[%s2979_s2 + $0x3f0] sm:$0xff]  ;;  %v1791_v29 = vpack.c.bf16 %v1302_v18, %v1301_v15  ;;  %v1793_v31 = vpack.c.bf16 %v1320_v24, %v1319_v23  ;;  %v571_v57 = vsub.s32 6, %v2246_v61 }
  0x1a   : > { %v404_v25 = vrot.slane %v2295_v20, %v403_v10  ;;  %v412_v26 = vrot.slane %v2295_v20, %v411_v11  ;;  %v1352_v28 = vld [vmem:[%s2979_s2 + $0x3f8] sm:$0xff]  ;;  %v1823_v30 = vpack.c.bf16 %v1334_v22, %v1333_v19  ;;  %v1303_v32 = vld [vmem:[%s2979_s2 + $0x270] sm:$0xff]  ;;  %v283_v37 = vld [vmem:[%s2979_s2 + $0x80] sm:$0xff]  ;;  %v400_v54 = vrot.slane %v2295_v20, %v399_v39 }
  0x1b   : > { %1784 = vmatpush3.bf16.msra.mxu0 %v1783_v0  ;;  %v1304_v33 = vld [vmem:[%s2979_s2 + $0x278] sm:$0xff]  ;;  %v1335_v34 = vld [vmem:[%s2979_s2 + $0x370] sm:$0xff]  ;;  %v1825_v35 = vpack.c.bf16 %v1352_v28, %v1351_v27  ;;  %v284_v38 = vld [vmem:[%s2979_s2 + $0x88] sm:$0xff]  ;;  %v408_v58 = vrot.slane %v2295_v20, %v407_v43  ;;  %v572_v9 = vrot.slane %v2295_v20, %v571_v57 }
  0x1c   : > { %1816 = vmatpush3.bf16.msra.mxu1 %v1815_v1  ;;  %1786 = vmatprep.subr.bf16.mxu0 %v1785_v2  ;;  %v1336_v36 = vld [vmem:[%s2979_s2 + $0x378] sm:$0xff]  ;;  %v315_v40 = vld [vmem:[%s2979_s2 + $0x180] sm:$0xff]  ;;  %v316_v41 = vld [vmem:[%s2979_s2 + $0x188] sm:$0xff]  ;;  %v1795_v42 = vpack.c.bf16 %v1304_v33, %v1303_v32  ;;  %v1829_v45 = vpack.c.bf16 %v284_v38, %v283_v37 }
  0x1d   : > { %1818 = vmatprep.subr.bf16.mxu1 %v1817_v6  ;;  %481 = vmatprep.mubr.f32.mxu0 %v404_v25  ;;  %v1827_v44 = vpack.c.bf16 %v1336_v36, %v1335_v34  ;;  %v267_v46 = vld [vmem:[%s2979_s2] sm:$0xff]  ;;  %v268_v47 = vld [vmem:[%s2979_s2 + $0x8] sm:$0xff]  ;;  %v1861_v49 = vpack.c.bf16 %v316_v41, %v315_v40  ;;  %v285_v51 = vld [vmem:[%s2979_s2 + $0x90] sm:$0xff]  ;;  %v564_v6 = vrot.slane %v2295_v20, %v563_v53 }
  0x1e   : > { %551 = vmatprep.mubr.f32.mxu1 %v412_v26  ;;  %v299_v48 = vld [vmem:[%s2979_s2 + $0x100] sm:$0xff]  ;;  %v300_v50 = vld [vmem:[%s2979_s2 + $0x108] sm:$0xff]  ;;  %v286_v52 = vld [vmem:[%s2979_s2 + $0x98] sm:$0xff]  ;;  %v1831_v59 = vpack.c.bf16 %v268_v47, %v267_v46 }
  0x1f   : > { %1788 = vmatpush3.bf16.msra.mxu0 %v1787_v14  ;;  %v317_v55 = vld [vmem:[%s2979_s2 + $0x190] sm:$0xff]  ;;  %v318_v56 = vld [vmem:[%s2979_s2 + $0x198] sm:$0xff]  ;;  %v1863_v60 = vpack.c.bf16 %v300_v50, %v299_v48  ;;  %v1833_v62 = vpack.c.bf16 %v286_v52, %v285_v51  ;;  %v287_v4 = vld [vmem:[%s2979_s2 + $0xa0] sm:$0xff] }
  0x20   : > { %1820 = vmatpush3.bf16.msra.mxu1 %v1819_v16  ;;  %1790 = vmatprep.subr.bf16.mxu0 %v1789_v17  ;;  %v269_v63 = vld [vmem:[%s2979_s2 + $0x10] sm:$0xff]  ;;  %v270_v0 = vld [vmem:[%s2979_s2 + $0x18] sm:$0xff]  ;;  %v1865_v2 = vpack.c.bf16 %v318_v56, %v317_v55  ;;  %v288_v5 = vld [vmem:[%s2979_s2 + $0xa8] sm:$0xff] }
  0x21   : > { %1822 = vmatprep.subr.bf16.mxu1 %v1821_v21  ;;  %v301_v1 = vld [vmem:[%s2979_s2 + $0x110] sm:$0xff]  ;;  %v302_v3 = vld [vmem:[%s2979_s2 + $0x118] sm:$0xff]  ;;  %v319_v7 = vld [vmem:[%s2979_s2 + $0x1a0] sm:$0xff]  ;;  %v1835_v12 = vpack.c.bf16 %v270_v0, %v269_v63  ;;  %v1837_v14 = vpack.c.bf16 %v288_v5, %v287_v4 }
  0x22   : > { %v320_v8 = vld [vmem:[%s2979_s2 + $0x1a8] sm:$0xff]  ;;  %v1867_v13 = vpack.c.bf16 %v302_v3, %v301_v1  ;;  %v271_v15 = vld [vmem:[%s2979_s2 + $0x20] sm:$0xff]  ;;  %v289_v21 = vld [vmem:[%s2979_s2 + $0xb0] sm:$0xff] }
  0x23   : > { %1792 = vmatpush3.bf16.msra.mxu0 %v1791_v29  ;;  %v272_v16 = vld [vmem:[%s2979_s2 + $0x28] sm:$0xff]  ;;  %v303_v17 = vld [vmem:[%s2979_s2 + $0x120] sm:$0xff]  ;;  %v1869_v18 = vpack.c.bf16 %v320_v8, %v319_v7  ;;  %v290_v22 = vld [vmem:[%s2979_s2 + $0xb8] sm:$0xff] }
  0x24   : > { %1824 = vmatpush3.bf16.msra.mxu1 %v1823_v30  ;;  %1794 = vmatprep.subr.bf16.mxu0 %v1793_v31  ;;  %v304_v19 = vld [vmem:[%s2979_s2 + $0x128] sm:$0xff]  ;;  %v321_v23 = vld [vmem:[%s2979_s2 + $0x1b0] sm:$0xff]  ;;  %v322_v24 = vld [vmem:[%s2979_s2 + $0x1b8] sm:$0xff]  ;;  %v1839_v25 = vpack.c.bf16 %v272_v16, %v271_v15  ;;  %v1841_v27 = vpack.c.bf16 %v290_v22, %v289_v21 }
  0x25   : > { %1826 = vmatprep.subr.bf16.mxu1 %v1825_v35  ;;  %v1871_v26 = vpack.c.bf16 %v304_v19, %v303_v17  ;;  %v273_v28 = vld [vmem:[%s2979_s2 + $0x30] sm:$0xff]  ;;  %v274_v29 = vld [vmem:[%s2979_s2 + $0x38] sm:$0xff]  ;;  %v1873_v31 = vpack.c.bf16 %v322_v24, %v321_v23  ;;  %v291_v33 = vld [vmem:[%s2979_s2 + $0xc0] sm:$0xff] }
  0x26   : > { %v305_v30 = vld [vmem:[%s2979_s2 + $0x130] sm:$0xff]  ;;  %v306_v32 = vld [vmem:[%s2979_s2 + $0x138] sm:$0xff]  ;;  %v292_v34 = vld [vmem:[%s2979_s2 + $0xc8] sm:$0xff]  ;;  %v1843_v37 = vpack.c.bf16 %v274_v29, %v273_v28 }
  0x27   : > { %1796 = vmatpush3.bf16.msra.mxu0 %v1795_v42  ;;  %v323_v35 = vld [vmem:[%s2979_s2 + $0x1c0] sm:$0xff]  ;;  %v324_v36 = vld [vmem:[%s2979_s2 + $0x1c8] sm:$0xff]  ;;  %v1875_v38 = vpack.c.bf16 %v306_v32, %v305_v30  ;;  %v1845_v40 = vpack.c.bf16 %v292_v34, %v291_v33  ;;  %v293_v47 = vld [vmem:[%s2979_s2 + $0xd0] sm:$0xff] }
  0x28   : > { %1828 = vmatpush3.bf16.msra.mxu1 %v1827_v44  ;;  %1830 = vmatprep.subr.bf16.mxu0 %v1829_v45  ;;  %v275_v41 = vld [vmem:[%s2979_s2 + $0x40] sm:$0xff]  ;;  %v276_v42 = vld [vmem:[%s2979_s2 + $0x48] sm:$0xff]  ;;  %v1877_v45 = vpack.c.bf16 %v324_v36, %v323_v35  ;;  %v294_v48 = vld [vmem:[%s2979_s2 + $0xd8] sm:$0xff] }
  0x29   : > { %1862 = vmatprep.subr.bf16.mxu1 %v1861_v49  ;;  %v307_v44 = vld [vmem:[%s2979_s2 + $0x140] sm:$0xff]  ;;  %v308_v46 = vld [vmem:[%s2979_s2 + $0x148] sm:$0xff]  ;;  %v325_v49 = vld [vmem:[%s2979_s2 + $0x1d0] sm:$0xff]  ;;  %v1847_v51 = vpack.c.bf16 %v276_v42, %v275_v41 }
  0x2a   : > { %482 = vmatmul.mubr.f32.vlgmr.msra.gmra.mrb[0].mxu0 %v400_v54  ;;  %v326_v50 = vld [vmem:[%s2979_s2 + $0x1d8] sm:$0xff]  ;;  %v1879_v52 = vpack.c.bf16 %v308_v46, %v307_v44  ;;  %v1849_v54 = vpack.c.bf16 %v294_v48, %v293_v47  ;;  %v277_v55 = vld [vmem:[%s2979_s2 + $0x50] sm:$0xff]  ;;  %v296_v63 = vld [vmem:[%s2979_s2 + $0xe8] sm:$0xff] }
  0x2b   : > { %552 = vmatmul.mubr.f32.vlgmr.msra.gmra.mrb[0].mxu1 %v408_v58  ;;  %1832 = vmatpush3.bf16.msra.mxu0 %v1831_v59  ;;  %v278_v56 = vld [vmem:[%s2979_s2 + $0x58] sm:$0xff]  ;;  %v309_v58 = vld [vmem:[%s2979_s2 + $0x150] sm:$0xff]  ;;  %v1881_v59 = vpack.c.bf16 %v326_v50, %v325_v49  ;;  %v327_v0 = vld [vmem:[%s2979_s2 + $0x1e0] sm:$0xff] }
  0x2c   : > { %1864 = vmatpush3.bf16.msra.mxu1 %v1863_v60  ;;  %1834 = vmatprep.subr.bf16.mxu0 %v1833_v62  ;;  %v310_v60 = vld [vmem:[%s2979_s2 + $0x158] sm:$0xff]  ;;  %v295_v62 = vld [vmem:[%s2979_s2 + $0xe0] sm:$0xff]  ;;  %v328_v1 = vld [vmem:[%s2979_s2 + $0x1e8] sm:$0xff] }
  0x2d   : > { %1866 = vmatprep.subr.bf16.mxu1 %v1865_v2  ;;  %641 = vmatprep.mubr.f32.mxu0 %v564_v6  ;;  %v1851_v2 = vpack.c.bf16 %v278_v56, %v277_v55  ;;  %v1883_v3 = vpack.c.bf16 %v310_v60, %v309_v58  ;;  %v1853_v4 = vpack.c.bf16 %v296_v63, %v295_v62  ;;  %v279_v5 = vld [vmem:[%s2979_s2 + $0x60] sm:$0xff]  ;;  %v280_v6 = vld [vmem:[%s2979_s2 + $0x68] sm:$0xff]  ;;  %v330_v15 = vld [vmem:[%s2979_s2 + $0x1f8] sm:$0xff] }
  0x2e   : > { %711 = vmatprep.mubr.f32.mxu1 %v572_v9  ;;  %v311_v7 = vld [vmem:[%s2979_s2 + $0x160] sm:$0xff]  ;;  %v1885_v8 = vpack.c.bf16 %v328_v1, %v327_v0  ;;  %v312_v9 = vld [vmem:[%s2979_s2 + $0x168] sm:$0xff]  ;;  %v1855_v16 = vpack.c.bf16 %v280_v6, %v279_v5  ;;  %v281_v19 = vld [vmem:[%s2979_s2 + $0x70] sm:$0xff] }
  0x2f   : > { %1836 = vmatpush3.bf16.msra.mxu0 %v1835_v12  ;;  %v297_v12 = vld [vmem:[%s2979_s2 + $0xf0] sm:$0xff]  ;;  %v1887_v17 = vpack.c.bf16 %v312_v9, %v311_v7  ;;  %v282_v21 = vld [vmem:[%s2979_s2 + $0x78] sm:$0xff]  ;;  %v1401_v28 = vld [vmem:[%s2979_s2 + $0x580] sm:$0xff] }
  0x30   : > { %1868 = vmatpush3.bf16.msra.mxu1 %v1867_v13  ;;  %1838 = vmatprep.subr.bf16.mxu0 %v1837_v14  ;;  %v298_v13 = vld [vmem:[%s2979_s2 + $0xf8] sm:$0xff]  ;;  %v329_v14 = vld [vmem:[%s2979_s2 + $0x1f0] sm:$0xff]  ;;  %v1402_v29 = vld [vmem:[%s2979_s2 + $0x588] sm:$0xff]  ;;  %v1859_v30 = vpack.c.bf16 %v282_v21, %v281_v19 }
  0x31   : > { %1870 = vmatprep.subr.bf16.mxu1 %v1869_v18  ;;  %v1857_v18 = vpack.c.bf16 %v298_v13, %v297_v12  ;;  %v313_v22 = vld [vmem:[%s2979_s2 + $0x170] sm:$0xff]  ;;  %v1889_v23 = vpack.c.bf16 %v330_v15, %v329_v14  ;;  %v314_v24 = vld [vmem:[%s2979_s2 + $0x178] sm:$0xff]  ;;  %v1353_v34 = vld [vmem:[%s2979_s2 + $0x400] sm:$0xff] }
  0x32   : > { %v1891_v32 = vpack.c.bf16 %v314_v24, %v313_v22  ;;  %v1354_v35 = vld [vmem:[%s2979_s2 + $0x408] sm:$0xff]  ;;  %v1385_v36 = vld [vmem:[%s2979_s2 + $0x500] sm:$0xff]  ;;  %v1372_v41 = vld [vmem:[%s2979_s2 + $0x498] sm:$0xff] }
  0x33   : > { %1840 = vmatpush3.bf16.msra.mxu0 %v1839_v25  ;;  %v1369_v25 = vld [vmem:[%s2979_s2 + $0x480] sm:$0xff]  ;;  %v1404_v46 = vld [vmem:[%s2979_s2 + $0x598] sm:$0xff]  ;;  %v1895_v48 = vpack.c.bf16 %v1354_v35, %v1353_v34  ;;  %v1374_v58 = vld [vmem:[%s2979_s2 + $0x4a8] sm:$0xff] }
  0x34   : > { %1872 = vmatpush3.bf16.msra.mxu1 %v1871_v26  ;;  %1842 = vmatprep.subr.bf16.mxu0 %v1841_v27  ;;  %v1370_v26 = vld [vmem:[%s2979_s2 + $0x488] sm:$0xff]  ;;  %v559_v27 = vsub.s32 0, %v2246_v61  ;;  %v2575_v42 = vld [vmem:[%s251_s7] sm:$0xff]  ;;  %v1375_v6 = vld [vmem:[%s2979_s2 + $0x4b0] sm:$0xff] }
  0x35   : > { %1874 = vmatprep.subr.bf16.mxu1 %v1873_v31  ;;  %v567_v31 = vsub.s32 4, %v2246_v61  ;;  %v1893_v33 = vpack.c.bf16 %v1370_v26, %v1369_v25  ;;  %v1373_v56 = vld [vmem:[%s2979_s2 + $0x4a0] sm:$0xff]  ;;  %v1406_v62 = vld [vmem:[%s2979_s2 + $0x5a8] sm:$0xff]  ;;  %v798_v63 = vrot.slane %v2575_v42, %v571_v57  ;;  %v1376_v7 = vld [vmem:[%s2979_s2 + $0x4b8] sm:$0xff] }
  0x36   : > { %v560_v44 = vrot.slane %v2295_v20, %v559_v27  ;;  %v1405_v60 = vld [vmem:[%s2979_s2 + $0x5a0] sm:$0xff]  ;;  %v1390_v5 = vld [vmem:[%s2979_s2 + $0x528] sm:$0xff]  ;;  %v1408_v9 = vld [vmem:[%s2979_s2 + $0x5b8] sm:$0xff]  ;;  %v1905_v14 = vpack.c.bf16 %v1376_v7, %v1375_v6 }
  0x37   : > { %1844 = vmatpush3.bf16.msra.mxu0 %v1843_v37  ;;  %v1925_v37 = vpack.c.bf16 %v1402_v29, %v1401_v28  ;;  %v568_v47 = vrot.slane %v2295_v20, %v567_v31  ;;  %v1388_v20 = vld [vmem:[%s2979_s2 + $0x518] sm:$0xff]  ;;  %v1933_v57 = vpack.c.bf16 %v1406_v62, %v1405_v60  ;;  %v1359_v15 = vld [vmem:[%s2979_s2 + $0x430] sm:$0xff]  ;;  %v1377_v21 = vld [vmem:[%s2979_s2 + $0x4c0] sm:$0xff] }
  0x38   : > { %1876 = vmatpush3.bf16.msra.mxu1 %v1875_v38  ;;  %1846 = vmatprep.subr.bf16.mxu0 %v1845_v40  ;;  %v1386_v38 = vld [vmem:[%s2979_s2 + $0x508] sm:$0xff]  ;;  %v1371_v40 = vld [vmem:[%s2979_s2 + $0x490] sm:$0xff]  ;;  %v1392_v19 = vld [vmem:[%s2979_s2 + $0x538] sm:$0xff] }
  0x39   : > { %1878 = vmatprep.subr.bf16.mxu1 %v1877_v45  ;;  %v1403_v45 = vld [vmem:[%s2979_s2 + $0x590] sm:$0xff]  ;;  %v1927_v49 = vpack.c.bf16 %v1386_v38, %v1385_v36  ;;  %v1897_v50 = vpack.c.bf16 %v1372_v41, %v1371_v40  ;;  %v1378_v22 = vld [vmem:[%s2979_s2 + $0x4c8] sm:$0xff]  ;;  %v1361_v29 = vld [vmem:[%s2979_s2 + $0x440] sm:$0xff] }
  0x3a   : > { %v1929_v55 = vpack.c.bf16 %v1404_v46, %v1403_v45  ;;  %v1410_v24 = vld [vmem:[%s2979_s2 + $0x5c8] sm:$0xff]  ;;  %v1909_v28 = vpack.c.bf16 %v1378_v22, %v1377_v21  ;;  %v1379_v35 = vld [vmem:[%s2979_s2 + $0x4d0] sm:$0xff]  ;;  %v1380_v36 = vld [vmem:[%s2979_s2 + $0x4d8] sm:$0xff] }
  0x3b   : > { %1848 = vmatpush3.bf16.msra.mxu0 %v1847_v51  ;;  %v1355_v51 = vld [vmem:[%s2979_s2 + $0x410] sm:$0xff]  ;;  %v1394_v34 = vld [vmem:[%s2979_s2 + $0x548] sm:$0xff]  ;;  %v1412_v38 = vld [vmem:[%s2979_s2 + $0x5d8] sm:$0xff] }
  0x3c   : > { %1880 = vmatpush3.bf16.msra.mxu1 %v1879_v52  ;;  %1850 = vmatprep.subr.bf16.mxu0 %v1849_v54  ;;  %v1356_v52 = vld [vmem:[%s2979_s2 + $0x418] sm:$0xff]  ;;  %v1387_v54 = vld [vmem:[%s2979_s2 + $0x510] sm:$0xff]  ;;  %v1397_v60 = vld [vmem:[%s2979_s2 + $0x560] sm:$0xff] }
  0x3d   : > { %1882 = vmatprep.subr.bf16.mxu1 %v1881_v59  ;;  %v790_v59 = vrot.slane %v2575_v42, %v563_v53  ;;  %v1899_v0 = vpack.c.bf16 %v1356_v52, %v1355_v51  ;;  %v1931_v1 = vpack.c.bf16 %v1388_v20, %v1387_v54  ;;  %v1901_v53 = vpack.c.bf16 %v1374_v58, %v1373_v56  ;;  %v1363_v45 = vld [vmem:[%s2979_s2 + $0x450] sm:$0xff]  ;;  %v1364_v46 = vld [vmem:[%s2979_s2 + $0x458] sm:$0xff]  ;;  %v1382_v51 = vld [vmem:[%s2979_s2 + $0x4e8] sm:$0xff] }
  0x3e   : > { %v1413_v52 = vld [vmem:[%s2979_s2 + $0x5e0] sm:$0xff]  ;;  %v1414_v54 = vld [vmem:[%s2979_s2 + $0x5e8] sm:$0xff]  ;;  %v1368_v6 = vld [vmem:[%s2979_s2 + $0x478] sm:$0xff] }
  0x3f   : > { %1852 = vmatpush3.bf16.msra.mxu0 %v1851_v2  ;;  %v1357_v2 = vld [vmem:[%s2979_s2 + $0x420] sm:$0xff]  ;;  %v1949_v62 = vpack.c.bf16 %v1414_v54, %v1413_v52  ;;  %v1399_v7 = vld [vmem:[%s2979_s2 + $0x570] sm:$0xff]  ;;  %v1418_v21 = vld [vmem:[%s2979_s2 + $0x608] sm:$0xff] }
  0x40   : > { %1884 = vmatpush3.bf16.msra.mxu1 %v1883_v3  ;;  %1854 = vmatprep.subr.bf16.mxu0 %v1853_v4  ;;  %v1358_v3 = vld [vmem:[%s2979_s2 + $0x428] sm:$0xff]  ;;  %v1389_v4 = vld [vmem:[%s2979_s2 + $0x520] sm:$0xff] }
  0x41   : > { %1886 = vmatprep.subr.bf16.mxu1 %v1885_v8  ;;  %v1407_v8 = vld [vmem:[%s2979_s2 + $0x5b0] sm:$0xff]  ;;  %v1903_v12 = vpack.c.bf16 %v1358_v3, %v1357_v2  ;;  %v1935_v13 = vpack.c.bf16 %v1390_v5, %v1389_v4  ;;  %v1365_v58 = vld [vmem:[%s2979_s2 + $0x460] sm:$0xff]  ;;  %v1416_v2 = vld [vmem:[%s2979_s2 + $0x5f8] sm:$0xff] }
  0x42   : > { %v1367_v5 = vld [vmem:[%s2979_s2 + $0x470] sm:$0xff]  ;;  %v1449_v22 = vld [vmem:[%s2979_s2 + $0x700] sm:$0xff]  ;;  %v1454_v54 = vld [vmem:[%s2979_s2 + $0x728] sm:$0xff] }
  0x43   : > { %1856 = vmatpush3.bf16.msra.mxu0 %v1855_v16  ;;  %v1360_v16 = vld [vmem:[%s2979_s2 + $0x438] sm:$0xff]  ;;  %v1453_v52 = vld [vmem:[%s2979_s2 + $0x720] sm:$0xff] }
  0x44   : > { %1888 = vmatpush3.bf16.msra.mxu1 %v1887_v17  ;;  %1858 = vmatprep.subr.bf16.mxu0 %v1857_v18  ;;  %v1391_v17 = vld [vmem:[%s2979_s2 + $0x530] sm:$0xff]  ;;  %v1937_v18 = vpack.c.bf16 %v1408_v9, %v1407_v8  ;;  %v1907_v25 = vpack.c.bf16 %v1360_v16, %v1359_v15  ;;  %v1400_v9 = vld [vmem:[%s2979_s2 + $0x578] sm:$0xff]  ;;  %v1466_v15 = vld [vmem:[%s2979_s2 + $0x788] sm:$0xff]  ;;  %v1923_v16 = vpack.c.bf16 %v1368_v6, %v1367_v5 }
  0x45   : > { %1890 = vmatprep.subr.bf16.mxu1 %v1889_v23  ;;  %v1409_v23 = vld [vmem:[%s2979_s2 + $0x5c0] sm:$0xff]  ;;  %v1939_v26 = vpack.c.bf16 %v1392_v19, %v1391_v17  ;;  %v1955_v17 = vpack.c.bf16 %v1400_v9, %v1399_v7  ;;  %v1474_v5 = vld [vmem:[%s2979_s2 + $0x7c8] sm:$0xff] }
  0x46   : > { %v1417_v19 = vld [vmem:[%s2979_s2 + $0x600] sm:$0xff] }
  0x47   : > { %1860 = vmatpush3.bf16.msra.mxu0 %v1859_v30  ;;  %v1362_v30 = vld [vmem:[%s2979_s2 + $0x448] sm:$0xff]  ;;  %v1425_v9 = vld [vmem:[%s2979_s2 + $0x640] sm:$0xff] }
  0x48   : > { %1892 = vmatpush3.bf16.msra.mxu1 %v1891_v32  ;;  %1894 = vmatprep.subr.bf16.mxu0 %v1893_v33  ;;  %v1393_v32 = vld [vmem:[%s2979_s2 + $0x540] sm:$0xff]  ;;  %v1941_v33 = vpack.c.bf16 %v1410_v24, %v1409_v23  ;;  %v1911_v40 = vpack.c.bf16 %v1362_v30, %v1361_v29  ;;  %v1450_v24 = vld [vmem:[%s2979_s2 + $0x708] sm:$0xff]  ;;  %v1467_v29 = vld [vmem:[%s2979_s2 + $0x790] sm:$0xff] }
  0x49   : > { %1926 = vmatprep.subr.bf16.mxu1 %v1925_v37  ;;  %v1411_v37 = vld [vmem:[%s2979_s2 + $0x5d0] sm:$0xff]  ;;  %v1943_v41 = vpack.c.bf16 %v1394_v34, %v1393_v32  ;;  %v1468_v30 = vld [vmem:[%s2979_s2 + $0x798] sm:$0xff]  ;;  %v794_v32 = vrot.slane %v2575_v42, %v567_v31  ;;  %v1991_v34 = vpack.c.bf16 %v1450_v24, %v1449_v22 }
  0x4a   : > { %642 = vmatmul.mubr.f32.vlgmr.msra.gmra.mrb[2].mxu0 %v560_v44  ;;  %v1913_v44 = vpack.c.bf16 %v1380_v36, %v1379_v35  ;;  %v1420_v36 = vld [vmem:[%s2979_s2 + $0x618] sm:$0xff]  ;;  %v1427_v24 = vld [vmem:[%s2979_s2 + $0x650] sm:$0xff] }
  0x4b   : > { %712 = vmatmul.mubr.f32.vlgmr.msra.gmra.mrb[2].mxu1 %v568_v47  ;;  %1896 = vmatpush3.bf16.msra.mxu0 %v1895_v48  ;;  %v1395_v47 = vld [vmem:[%s2979_s2 + $0x550] sm:$0xff]  ;;  %v1945_v48 = vpack.c.bf16 %v1412_v38, %v1411_v37  ;;  %v1993_v38 = vpack.c.bf16 %v1468_v30, %v1467_v29  ;;  %v1452_v31 = vld [vmem:[%s2979_s2 + $0x718] sm:$0xff]  ;;  %v1445_v30 = vld [vmem:[%s2979_s2 + $0x6e0] sm:$0xff] }
  0x4c   : > { %1928 = vmatpush3.bf16.msra.mxu1 %v1927_v49  ;;  %1898 = vmatprep.subr.bf16.mxu0 %v1897_v50  ;;  %v1396_v49 = vld [vmem:[%s2979_s2 + $0x558] sm:$0xff]  ;;  %v1381_v50 = vld [vmem:[%s2979_s2 + $0x4e0] sm:$0xff]  ;;  %v1451_v37 = vld [vmem:[%s2979_s2 + $0x710] sm:$0xff] }
  0x4d   : > { %1930 = vmatprep.subr.bf16.mxu1 %v1929_v55  ;;  %867 = vmatprep.mubr.f32.mxu0 %v790_v59  ;;  %v1915_v55 = vpack.c.bf16 %v1364_v46, %v1363_v45  ;;  %v1947_v20 = vpack.c.bf16 %v1396_v49, %v1395_v47  ;;  %v1917_v56 = vpack.c.bf16 %v1382_v51, %v1381_v50  ;;  %v1366_v59 = vld [vmem:[%s2979_s2 + $0x468] sm:$0xff]  ;;  %v1469_v45 = vld [vmem:[%s2979_s2 + $0x7a0] sm:$0xff]  ;;  %v1460_v29 = vld [vmem:[%s2979_s2 + $0x758] sm:$0xff] }
  0x4e   : > { %937 = vmatprep.mubr.f32.mxu1 %v798_v63  ;;  %v1398_v63 = vld [vmem:[%s2979_s2 + $0x568] sm:$0xff]  ;;  %v1919_v3 = vpack.c.bf16 %v1366_v59, %v1365_v58  ;;  %v1024_v47 = vrot.slane %v2575_v42, %v411_v11  ;;  %v1995_v49 = vpack.c.bf16 %v1452_v31, %v1451_v37  ;;  %v1421_v50 = vld [vmem:[%s2979_s2 + $0x620] sm:$0xff]  ;;  %v1472_v58 = vld [vmem:[%s2979_s2 + $0x7b8] sm:$0xff] }
  0x4f   : > { %1900 = vmatpush3.bf16.msra.mxu0 %v1899_v0  ;;  %v1383_v0 = vld [vmem:[%s2979_s2 + $0x4f0] sm:$0xff]  ;;  %v1951_v4 = vpack.c.bf16 %v1398_v63, %v1397_v60  ;;  %v1470_v46 = vld [vmem:[%s2979_s2 + $0x7a8] sm:$0xff]  ;;  %v1999_v60 = vpack.c.bf16 %v1454_v54, %v1453_v52  ;;  %v1429_v37 = vld [vmem:[%s2979_s2 + $0x660] sm:$0xff] }
  0x50   : > { %1932 = vmatpush3.bf16.msra.mxu1 %v1931_v1  ;;  %1902 = vmatprep.subr.bf16.mxu0 %v1901_v53  ;;  %v1384_v1 = vld [vmem:[%s2979_s2 + $0x4f8] sm:$0xff]  ;;  %v1415_v53 = vld [vmem:[%s2979_s2 + $0x5f0] sm:$0xff]  ;;  %v1422_v51 = vld [vmem:[%s2979_s2 + $0x628] sm:$0xff]  ;;  %v1997_v11 = vpack.c.bf16 %v1470_v46, %v1469_v45 }
  0x51   : > { %1934 = vmatprep.subr.bf16.mxu1 %v1933_v57  ;;  %v1921_v57 = vpack.c.bf16 %v1384_v1, %v1383_v0  ;;  %v1953_v8 = vpack.c.bf16 %v1416_v2, %v1415_v53  ;;  %v1967_v59 = vpack.c.bf16 %v1422_v51, %v1421_v50  ;;  %v1423_v63 = vld [vmem:[%s2979_s2 + $0x630] sm:$0xff]  ;;  %v1424_v0 = vld [vmem:[%s2979_s2 + $0x638] sm:$0xff]  ;;  %v1461_v31 = vld [vmem:[%s2979_s2 + $0x760] sm:$0xff] }
  0x52   : > { %v1455_v1 = vld [vmem:[%s2979_s2 + $0x730] sm:$0xff]  ;;  %v1456_v2 = vld [vmem:[%s2979_s2 + $0x738] sm:$0xff]  ;;  %v1971_v6 = vpack.c.bf16 %v1424_v0, %v1423_v63 }
  0x53   : > { %1904 = vmatpush3.bf16.msra.mxu0 %v1903_v12  ;;  %v1433_v12 = vld [vmem:[%s2979_s2 + $0x680] sm:$0xff]  ;;  %v2003_v7 = vpack.c.bf16 %v1456_v2, %v1455_v1  ;;  %v1448_v45 = vld [vmem:[%s2979_s2 + $0x6f8] sm:$0xff]  ;;  %v1479_v46 = vld [vmem:[%s2979_s2 + $0x7f0] sm:$0xff] }
  0x54   : > { %1936 = vmatpush3.bf16.msra.mxu1 %v1935_v13  ;;  %1906 = vmatprep.subr.bf16.mxu0 %v1905_v14  ;;  %v1434_v13 = vld [vmem:[%s2979_s2 + $0x688] sm:$0xff]  ;;  %v1465_v14 = vld [vmem:[%s2979_s2 + $0x780] sm:$0xff]  ;;  %v1431_v50 = vld [vmem:[%s2979_s2 + $0x670] sm:$0xff] }
  0x55   : > { %1938 = vmatprep.subr.bf16.mxu1 %v1937_v18  ;;  %v1957_v18 = vpack.c.bf16 %v1434_v13, %v1433_v12  ;;  %v1989_v23 = vpack.c.bf16 %v1466_v15, %v1465_v14  ;;  %v1426_v12 = vld [vmem:[%s2979_s2 + $0x648] sm:$0xff]  ;;  %v1457_v13 = vld [vmem:[%s2979_s2 + $0x740] sm:$0xff]  ;;  %v1432_v51 = vld [vmem:[%s2979_s2 + $0x678] sm:$0xff] }
  0x56   : > { %v1458_v15 = vld [vmem:[%s2979_s2 + $0x748] sm:$0xff]  ;;  %v1464_v54 = vld [vmem:[%s2979_s2 + $0x778] sm:$0xff] }
  0x57   : > { %1908 = vmatpush3.bf16.msra.mxu0 %v1907_v25  ;;  %v1435_v25 = vld [vmem:[%s2979_s2 + $0x690] sm:$0xff]  ;;  %v2007_v22 = vpack.c.bf16 %v1458_v15, %v1457_v13 }
  0x58   : > { %1940 = vmatpush3.bf16.msra.mxu1 %v1939_v26  ;;  %1910 = vmatprep.subr.bf16.mxu0 %v1909_v28  ;;  %v1436_v26 = vld [vmem:[%s2979_s2 + $0x698] sm:$0xff]  ;;  %v786_v28 = vrot.slane %v2575_v42, %v559_v27  ;;  %v1419_v27 = vld [vmem:[%s2979_s2 + $0x610] sm:$0xff] }
  0x59   : > { %1942 = vmatprep.subr.bf16.mxu1 %v1941_v33  ;;  %v1959_v33 = vpack.c.bf16 %v1418_v21, %v1417_v19  ;;  %v1961_v35 = vpack.c.bf16 %v1436_v26, %v1435_v25  ;;  %v1476_v19 = vld [vmem:[%s2979_s2 + $0x7d8] sm:$0xff]  ;;  %v1975_v21 = vpack.c.bf16 %v1426_v12, %v1425_v9  ;;  %v1459_v26 = vld [vmem:[%s2979_s2 + $0x750] sm:$0xff] }
  0x5a   : > { %v1428_v25 = vld [vmem:[%s2979_s2 + $0x658] sm:$0xff] }
  0x5b   : > { %1912 = vmatpush3.bf16.msra.mxu0 %v1911_v40  ;;  %v1437_v40 = vld [vmem:[%s2979_s2 + $0x6a0] sm:$0xff] }
  0x5c   : > { %1944 = vmatpush3.bf16.msra.mxu1 %v1943_v41  ;;  %1914 = vmatprep.subr.bf16.mxu0 %v1913_v44  ;;  %v1438_v41 = vld [vmem:[%s2979_s2 + $0x6a8] sm:$0xff]  ;;  %v1016_v44 = vrot.slane %v2575_v42, %v403_v10 }
  0x5d   : > { %1946 = vmatprep.subr.bf16.mxu1 %v1945_v48  ;;  %v1963_v48 = vpack.c.bf16 %v1420_v36, %v1419_v27  ;;  %v1965_v10 = vpack.c.bf16 %v1438_v41, %v1437_v40  ;;  %v2011_v27 = vpack.c.bf16 %v1460_v29, %v1459_v26  ;;  %v1462_v41 = vld [vmem:[%s2979_s2 + $0x768] sm:$0xff] }
  0x5f   : > { %1916 = vmatpush3.bf16.msra.mxu0 %v1915_v55  ;;  %v1439_v55 = vld [vmem:[%s2979_s2 + $0x6b0] sm:$0xff] }
  0x60   : > { %1948 = vmatpush3.bf16.msra.mxu1 %v1947_v20  ;;  %1918 = vmatprep.subr.bf16.mxu0 %v1917_v56  ;;  %v1440_v20 = vld [vmem:[%s2979_s2 + $0x6b8] sm:$0xff]  ;;  %v1471_v56 = vld [vmem:[%s2979_s2 + $0x7b0] sm:$0xff] }
  0x61   : > { %1950 = vmatprep.subr.bf16.mxu1 %v1949_v62  ;;  %v1969_v62 = vpack.c.bf16 %v1440_v20, %v1439_v55  ;;  %v2001_v53 = vpack.c.bf16 %v1472_v58, %v1471_v56  ;;  %v1987_v55 = vpack.c.bf16 %v1432_v51, %v1431_v50  ;;  %v1012_v56 = vrot.slane %v2575_v42, %v399_v39 }
  0x62   : > { %v1020_v58 = vrot.slane %v2575_v42, %v407_v43 }
  0x63   : > { %1920 = vmatpush3.bf16.msra.mxu0 %v1919_v3  ;;  %v1441_v3 = vld [vmem:[%s2979_s2 + $0x6c0] sm:$0xff] }
  0x64   : > { %1952 = vmatpush3.bf16.msra.mxu1 %v1951_v4  ;;  %1922 = vmatprep.subr.bf16.mxu0 %v1921_v57  ;;  %v1442_v4 = vld [vmem:[%s2979_s2 + $0x6c8] sm:$0xff]  ;;  %v1473_v57 = vld [vmem:[%s2979_s2 + $0x7c0] sm:$0xff] }
  0x65   : > { %1954 = vmatprep.subr.bf16.mxu1 %v1953_v8  ;;  %v1973_v8 = vpack.c.bf16 %v1442_v4, %v1441_v3  ;;  %v2005_v14 = vpack.c.bf16 %v1474_v5, %v1473_v57 }
  0x67   : > { %1924 = vmatpush3.bf16.msra.mxu0 %v1923_v16  ;;  %v1443_v16 = vld [vmem:[%s2979_s2 + $0x6d0] sm:$0xff] }
  0x68   : > { %1956 = vmatpush3.bf16.msra.mxu1 %v1955_v17  ;;  %1958 = vmatprep.subr.bf16.mxu0 %v1957_v18  ;;  %v1444_v17 = vld [vmem:[%s2979_s2 + $0x6d8] sm:$0xff]  ;;  %v1475_v18 = vld [vmem:[%s2979_s2 + $0x7d0] sm:$0xff] }
  0x69   : > { %1990 = vmatprep.subr.bf16.mxu1 %v1989_v23  ;;  %v1977_v23 = vpack.c.bf16 %v1444_v17, %v1443_v16 }
  0x6a   : > { %868 = vmatmul.mubr.f32.vlgmr.msra.gmra.mrb[4].mxu0 %v786_v28  ;;  %v2009_v28 = vpack.c.bf16 %v1476_v19, %v1475_v18 }
  0x6b   : > { %938 = vmatmul.mubr.f32.vlgmr.msra.gmra.mrb[4].mxu1 %v794_v32  ;;  %1960 = vmatpush3.bf16.msra.mxu0 %v1959_v33  ;;  %v1446_v32 = vld [vmem:[%s2979_s2 + $0x6e8] sm:$0xff]  ;;  %v1477_v33 = vld [vmem:[%s2979_s2 + $0x7e0] sm:$0xff] }
  0x6c   : > { %1992 = vmatpush3.bf16.msra.mxu1 %v1991_v34  ;;  %1962 = vmatprep.subr.bf16.mxu0 %v1961_v35  ;;  %v1478_v34 = vld [vmem:[%s2979_s2 + $0x7e8] sm:$0xff]  ;;  %v1979_v35 = vpack.c.bf16 %v1428_v25, %v1427_v24  ;;  %v1981_v36 = vpack.c.bf16 %v1446_v32, %v1445_v30 }
  0x6d   : > { %1994 = vmatprep.subr.bf16.mxu1 %v1993_v38  ;;  %1093 = vmatprep.mubr.f32.mxu0 %v1016_v44  ;;  %v1430_v38 = vld [vmem:[%s2979_s2 + $0x668] sm:$0xff]  ;;  %v2013_v40 = vpack.c.bf16 %v1478_v34, %v1477_v33  ;;  %v1447_v44 = vld [vmem:[%s2979_s2 + $0x6f0] sm:$0xff] }
  0x6e   : > { %1163 = vmatprep.mubr.f32.mxu1 %v1024_v47  ;;  %v1480_v47 = vld [vmem:[%s2979_s2 + $0x7f8] sm:$0xff] }
  0x6f   : > { %1964 = vmatpush3.bf16.msra.mxu0 %v1963_v48  ;;  %v1983_v48 = vpack.c.bf16 %v1430_v38, %v1429_v37  ;;  %v2017_v52 = vpack.c.bf16 %v1480_v47, %v1479_v46 }
  0x70   : > { %1996 = vmatpush3.bf16.msra.mxu1 %v1995_v49  ;;  %1966 = vmatprep.subr.bf16.mxu0 %v1965_v10  ;;  %v2015_v49 = vpack.c.bf16 %v1462_v41, %v1461_v31  ;;  %v1985_v10 = vpack.c.bf16 %v1448_v45, %v1447_v44 }
  0x71   : > { %1998 = vmatprep.subr.bf16.mxu1 %v1997_v11  ;;  %v1463_v11 = vld [vmem:[%s2979_s2 + $0x770] sm:$0xff] }
  0x72   : > { %v2019_v20 = vpack.c.bf16 %v1464_v54, %v1463_v11 }
  0x73   : > { %1968 = vmatpush3.bf16.msra.mxu0 %v1967_v59 }
  0x74   : > { %2000 = vmatpush3.bf16.msra.mxu1 %v1999_v60  ;;  %1970 = vmatprep.subr.bf16.mxu0 %v1969_v62 }
  0x75   : > { %2002 = vmatprep.subr.bf16.mxu1 %v2001_v53 }
  0x77   : > { %1972 = vmatpush3.bf16.msra.mxu0 %v1971_v6 }
  0x78   : > { %2004 = vmatpush3.bf16.msra.mxu1 %v2003_v7  ;;  %1974 = vmatprep.subr.bf16.mxu0 %v1973_v8 }
  0x79   : > { %2006 = vmatprep.subr.bf16.mxu1 %v2005_v14 }
  0x7b   : > { %1976 = vmatpush3.bf16.msra.mxu0 %v1975_v21 }
  0x7c   : > { %2008 = vmatpush3.bf16.msra.mxu1 %v2007_v22  ;;  %1978 = vmatprep.subr.bf16.mxu0 %v1977_v23  ;;  %v1170_v23 = vld [vmem:[%s2980_s3] sm:$0x1] }
  0x7d   : > { %2010 = vmatprep.subr.bf16.mxu1 %v2009_v28 }
  0x7f   : > { %1980 = vmatpush3.bf16.msra.mxu0 %v1979_v35 }
  0x80   : > { %2012 = vmatpush3.bf16.msra.mxu1 %v2011_v27  ;;  %1982 = vmatprep.subr.bf16.mxu0 %v1981_v36 }
  0x81   : > { %2014 = vmatprep.subr.bf16.mxu1 %v2013_v40 }
  0x83   : > { %1984 = vmatpush3.bf16.msra.mxu0 %v1983_v48 }
  0x84   : > { %2016 = vmatpush3.bf16.msra.mxu1 %v2015_v49  ;;  %1986 = vmatprep.subr.bf16.mxu0 %v1985_v10 }
  0x85   : > { %2018 = vmatprep.subr.bf16.mxu1 %v2017_v52 }
  0x87   : > { %1988 = vmatpush3.bf16.msra.mxu0 %v1987_v55 }
  0x88   : > { %2020 = vmatpush3.bf16.msra.mxu1 %v2019_v20 }
  0x8a   : > { %1094 = vmatmul.mubr.f32.vlgmr.msra.gmra.mrb[6].mxu0 %v1012_v56 }
  0x8b   : > { %1164 = vmatmul.mubr.f32.vlgmr.msra.gmra.mrb[6].mxu1 %v1020_v58 }
  0xfd   : > { %v1517_v59 = vpop.f32.mrb[0].mxu0 }
  0xfe   : > { %v1552_v60 = vpop.f32.mrb[0].mxu1  ;;  %v1518_v62 = vpop.f32.mrb[1].mxu0 }
  0xff   : > { %v1519_v63 = vadd.f32 %v1518_v62, %v1517_v59  ;;  %v1553_v0 = vpop.f32.mrb[1].mxu1 }
 0x100   : > { %v1554_v1 = vadd.f32 %v1553_v0, %v1552_v60 }
 0x102   : > { %v554_v53 = vadd.f32 %v1554_v1, %v1519_v63 }
 0x11d   : > { %v1587_v2 = vpop.f32.mrb[2].mxu0 }
 0x11e   : > { %v1622_v3 = vpop.f32.mrb[2].mxu1  ;;  %v1588_v4 = vpop.f32.mrb[3].mxu0 }
 0x11f   : > { %v1589_v57 = vadd.f32 %v1588_v4, %v1587_v2  ;;  %v1623_v39 = vpop.f32.mrb[3].mxu1 }
 0x120   : > { %v1624_v5 = vadd.f32 %v1623_v39, %v1622_v3 }
 0x121   : > { %v644_v6 = vadd.f32 %v1589_v57, %v554_v53 }
 0x123   : > { %v714_v61 = vadd.f32 %v1624_v5, %v644_v6 }
 0x13d   : > { %v1657_v7 = vpop.f32.mrb[4].mxu0 }
 0x13e   : > { %v1692_v43 = vpop.f32.mrb[4].mxu1  ;;  %v1658_v42 = vpop.f32.mrb[5].mxu0 }
 0x13f   : > { %v1659_v8 = vadd.f32 %v1658_v42, %v1657_v7  ;;  %v1693_v9 = vpop.f32.mrb[5].mxu1 }
 0x140   : > { %v1694_v12 = vadd.f32 %v1693_v9, %v1692_v43 }
 0x142   : > { %v940_v13 = vadd.f32 %v1694_v12, %v1659_v8 }
 0x144   : > { %v943_v14 = vadd.f32 %v940_v13, %v714_v61 }
 0x15d   : > { %v1727_v15 = vpop.f32.mrb[6].mxu0 }
 0x15e   : > { %v1762_v16 = vpop.f32.mrb[6].mxu1  ;;  %v1728_v17 = vpop.f32.mrb[7].mxu0 }
 0x15f   : > { %v1729_v18 = vadd.f32 %v1728_v17, %v1727_v15  ;;  %v1763_v19 = vpop.f32.mrb[7].mxu1 }
 0x160   : > { %v1764_v21 = vadd.f32 %v1763_v19, %v1762_v16 }
 0x162   : > { %v1166_v22 = vadd.f32 %v1764_v21, %v1729_v18 }
 0x164   : > { %v1169_v24 = vadd.f32 %v1166_v22, %v943_v14 }
 0x166   : > { %v1171_v25 = vadd.f32 %v1170_v23, %v1169_v24 }
 0x168   : > { %1172 = vst [vmem:[%s264_s22] sm:$0x1] %v1171_v25 }
 0x169 PF: > { %s14_s17 = sadd.s32 1, %s2067_s17   ;;  %s2982_s15 = smov %s2063_s16 }
 0x16a   : > { %p11_p5 = scmp.ge.s32.totalorder %s14_s17, 4   ;;  %s2983_s16 = smov %s2985_s18 }
 0x16c   :  { %13 = sbr.rel (!%p11_p5) target bundleno = 2 (0x2), region = 78 }

</bundles_post_ra>
